<compile_context>
chip_gen: v5e
topology: v5e:2x2
jax: 0.10.0
libtpu: 0.0.40
codegen_flags: <defaults>
</compile_context>

<pallas_src>
import jax
import jax.numpy as jnp
from jax.experimental import pallas as pl
from jax.experimental.pallas import tpu as pltpu


def ae_forward_kernel(x_ref,
                      w1_ref, b1_ref,      # encoder fc1
                      w2_ref, b2_ref,      # encoder fc2
                      wz_ref, bz_ref,      # folded encoder fc3 + decoder fc3
                      g2_ref, c2_ref,      # decoder fc2
                      g1_ref, c1_ref,      # decoder fc1
                      out_ref):
    def dense(h_bf16, w_ref, b_ref, relu):
        # bf16 x bf16 -> f32 accumulate on the MXU; bias add / ReLU in f32.
        acc = jnp.dot(h_bf16, w_ref[...],
                      preferred_element_type=jnp.float32) + b_ref[...]
        if relu:
            acc = jnp.maximum(acc, 0.0)
        return acc

    # f32 tile arrives via DMA; cast to bf16 on the VPU (free under the DMA).
    x = x_ref[...].astype(jnp.bfloat16)

    h = dense(x, w1_ref, b1_ref, True).astype(jnp.bfloat16)     # enc fc1 + relu
    h = dense(h, w2_ref, b2_ref, True).astype(jnp.bfloat16)     # enc fc2 + relu
    # enc fc3 (no relu) folded with dec fc3; relu applied after the fold.
    h = dense(h, wz_ref, bz_ref, True).astype(jnp.bfloat16)
    h = dense(h, g2_ref, c2_ref, True).astype(jnp.bfloat16)     # dec fc2 + relu
    y = dense(h, g1_ref, c1_ref, False)                         # dec fc1

    out_ref[...] = y.astype(out_ref.dtype)


def _pick_tile(batch):
    """Batch tile: >=2 grid steps (v7x megacore), multiple of 8, <=1024 rows."""
    half = (batch + 1) // 2
    tb = ((half + 7) // 8) * 8
    return max(8, min(1024, tb))


@jax.jit
def ae_forward(x, kparams):
    """x: [B, x_dim] float32; kparams: tuple from prepare_params()."""
    B, x_dim = x.shape
    tb = _pick_tile(B)
    num_tiles = pl.cdiv(B, tb)

    x_spec = pl.BlockSpec((tb, x_dim), lambda i: (i, 0))
    # Full-array blocks with constant index_map: weights/biases are DMA'd once
    # and stay VMEM-resident across all grid steps.
    param_specs = [pl.BlockSpec(a.shape, lambda i: (0, 0)) for a in kparams]
    out_spec = pl.BlockSpec((tb, x_dim), lambda i: (i, 0))

    return pl.pallas_call(
        ae_forward_kernel,
        out_shape=jax.ShapeDtypeStruct((B, x_dim), jnp.float32),
        grid=(num_tiles,),
        in_specs=[x_spec] + param_specs,
        out_specs=out_spec,
        compiler_params=pltpu.CompilerParams(
            dimension_semantics=("parallel",)),
    )(x, *kparams)


def init_linear(key, in_dim, out_dim):
    """PyTorch nn.Linear default init: U(-1/sqrt(in), 1/sqrt(in)).
    Returns (W_transposed [in, out], bias [1, out]) in f32."""
    kw, kb = jax.random.split(key)
    bound = 1.0 / jnp.sqrt(jnp.float32(in_dim))
    w = jax.random.uniform(kw, (in_dim, out_dim), jnp.float32, -bound, bound)
    b = jax.random.uniform(kb, (1, out_dim), jnp.float32, -bound, bound)
    return w, b


def init_params(key, x_dim, h1, h2, h3):
    keys = jax.random.split(key, 6)
    p = {}
    # Encoder
    p["w1"], p["b1"] = init_linear(keys[0], x_dim, h1)
    p["w2"], p["b2"] = init_linear(keys[1], h1, h2)
    p["w3"], p["b3"] = init_linear(keys[2], h2, h3)
    # Decoder (Generator): fc3: h3->h2, fc2: h2->h1, fc1: h1->x_dim
    p["g3"], p["c3"] = init_linear(keys[3], h3, h2)
    p["g2"], p["c2"] = init_linear(keys[4], h2, h1)
    p["g1"], p["c1"] = init_linear(keys[5], h1, x_dim)
    return p


def prepare_params(p):
    """One-time prep: fold enc-fc3 / dec-fc3 in f32, cast weights to bf16,
    keep biases f32 (for the f32 bias-add / ReLU epilogue)."""
    wz = p["w3"] @ p["g3"]                 # (h2, h2) f32 fold
    bz = p["b3"] @ p["g3"] + p["c3"]       # (1, h2)

    def w(a):
        return a.astype(jnp.bfloat16)

    def b(a):
        return a.astype(jnp.float32)

    return (w(p["w1"]), b(p["b1"]),
            w(p["w2"]), b(p["b2"]),
            w(wz),      b(bz),
            w(p["g2"]), b(p["c2"]),
            w(p["g1"]), b(p["c1"]))


def ae_forward_ref(x, kp):
    """Pure-JAX reference using the same bf16-operand / f32-accumulate recipe
    and the same folded params (numerics match the kernel by construction)."""
    w1, b1, w2, b2, wz, bz, g2, c2, g1, c1 = kp

    def dense(h, w, b, relu):
        acc = jnp.dot(h.astype(jnp.bfloat16), w,
                      preferred_element_type=jnp.float32) + b
        return jnp.maximum(acc, 0.0) if relu else acc

    h = dense(x, w1, b1, True)
    h = dense(h, w2, b2, True)
    h = dense(h, wz, bz, True)
    h = dense(h, g2, c2, True)
    return dense(h, g1, c1, False)


if __name__ == "__main__":
    # MLP-consistent shapes: batch of flat feature vectors.
    # B=512 -> tb=256 -> 2 pipelined grid steps (both v7x TensorCores busy).
    B, X_DIM, H1, H2, H3 = 512, 128, 64, 32, 16

    key = jax.random.PRNGKey(0)
    k_x, k_p = jax.random.split(key)
    x = jax.random.normal(k_x, (B, X_DIM), jnp.float32)
    params = init_params(k_p, X_DIM, H1, H2, H3)
    kparams = prepare_params(params)     # one-time bf16/f32 conversion + fold

    y = ae_forward(x, kparams)
    y = jax.block_until_ready(y)

    y_ref = ae_forward_ref(x, kparams)
    assert y.shape == (B, X_DIM)
    max_err = float(jnp.max(jnp.abs(y - y_ref)))
    # bf16 intermediates are intentional (match the kernel recipe); hence 2e-2.
    assert jnp.allclose(y, y_ref, atol=2e-2, rtol=2e-2), max_err

    print("KERNEL_OK")
</pallas_src>

<mosaic_0001>
module attributes {stable_mosaic.version = 11 : i64} {
  func.func @ae_forward_kernel(%arg0: i32, %arg1: memref<256x128xf32, #tpu.memory_space<vmem>>, %arg2: memref<128x64xbf16, #tpu.memory_space<vmem>>, %arg3: memref<1x64xf32, #tpu.memory_space<vmem>>, %arg4: memref<64x32xbf16, #tpu.memory_space<vmem>>, %arg5: memref<1x32xf32, #tpu.memory_space<vmem>>, %arg6: memref<32x32xbf16, #tpu.memory_space<vmem>>, %arg7: memref<1x32xf32, #tpu.memory_space<vmem>>, %arg8: memref<32x64xbf16, #tpu.memory_space<vmem>>, %arg9: memref<1x64xf32, #tpu.memory_space<vmem>>, %arg10: memref<64x128xbf16, #tpu.memory_space<vmem>>, %arg11: memref<1x128xf32, #tpu.memory_space<vmem>>, %arg12: memref<256x128xf32, #tpu.memory_space<vmem>>) attributes {dimension_semantics = [#tpu.dimension_semantics<parallel>], iteration_bounds = array<i64: 2>, scalar_prefetch = 0 : i64, scratch_operands = 0 : i64, tpu.core_type = #tpu.core_type<tc>, window_params = [{transform_indices = @transform_0, window_bounds = array<i64: 256, 128>}, {pipeline_mode = #tpu.pipeline_mode<synchronous>, transform_indices = @transform_1, window_bounds = array<i64: 128, 64>}, {pipeline_mode = #tpu.pipeline_mode<synchronous>, transform_indices = @transform_2, window_bounds = array<i64: 1, 64>}, {pipeline_mode = #tpu.pipeline_mode<synchronous>, transform_indices = @transform_3, window_bounds = array<i64: 64, 32>}, {pipeline_mode = #tpu.pipeline_mode<synchronous>, transform_indices = @transform_4, window_bounds = array<i64: 1, 32>}, {pipeline_mode = #tpu.pipeline_mode<synchronous>, transform_indices = @transform_5, window_bounds = array<i64: 32, 32>}, {pipeline_mode = #tpu.pipeline_mode<synchronous>, transform_indices = @transform_6, window_bounds = array<i64: 1, 32>}, {pipeline_mode = #tpu.pipeline_mode<synchronous>, transform_indices = @transform_7, window_bounds = array<i64: 32, 64>}, {pipeline_mode = #tpu.pipeline_mode<synchronous>, transform_indices = @transform_8, window_bounds = array<i64: 1, 64>}, {pipeline_mode = #tpu.pipeline_mode<synchronous>, transform_indices = @transform_9, window_bounds = array<i64: 64, 128>}, {pipeline_mode = #tpu.pipeline_mode<synchronous>, transform_indices = @transform_10, window_bounds = array<i64: 1, 128>}, {transform_indices = @transform_11, window_bounds = array<i64: 256, 128>}]} {
    %c0 = arith.constant 0 : index
    %c0_0 = arith.constant 0 : index
    %0 = vector.load %arg1[%c0, %c0_0] : memref<256x128xf32, #tpu.memory_space<vmem>>, vector<256x128xf32>
    %1 = arith.truncf %0 : vector<256x128xf32> to vector<256x128xbf16>
    %c0_1 = arith.constant 0 : index
    %c0_2 = arith.constant 0 : index
    %2 = vector.load %arg2[%c0_1, %c0_2] : memref<128x64xbf16, #tpu.memory_space<vmem>>, vector<128x64xbf16>
    %cst = arith.constant dense<0.000000e+00> : vector<256x64xf32>
    %3 = tpu.matmul %1, %2, %cst {dimension_numbers = #tpu.dot_dimension_numbers<[1], [0], [0], [1], [0, 0, 1, 1], [], []>} : vector<256x128xbf16>, vector<128x64xbf16>, vector<256x64xf32> -> vector<256x64xf32>
    %c0_3 = arith.constant 0 : index
    %c0_4 = arith.constant 0 : index
    %4 = vector.load %arg3[%c0_3, %c0_4] : memref<1x64xf32, #tpu.memory_space<vmem>>, vector<1x64xf32>
    %5 = vector.broadcast %4 : vector<1x64xf32> to vector<256x64xf32>
    %6 = arith.addf %3, %5 : vector<256x64xf32>
    %cst_5 = arith.constant 0.000000e+00 : f32
    %7 = vector.broadcast %cst_5 : f32 to vector<256x64xf32>
    %8 = arith.maximumf %6, %7 : vector<256x64xf32>
    %9 = arith.truncf %8 : vector<256x64xf32> to vector<256x64xbf16>
    %c0_6 = arith.constant 0 : index
    %c0_7 = arith.constant 0 : index
    %10 = vector.load %arg4[%c0_6, %c0_7] : memref<64x32xbf16, #tpu.memory_space<vmem>>, vector<64x32xbf16>
    %cst_8 = arith.constant dense<0.000000e+00> : vector<256x32xf32>
    %11 = tpu.matmul %9, %10, %cst_8 {dimension_numbers = #tpu.dot_dimension_numbers<[1], [0], [0], [1], [0, 0, 1, 1], [], []>} : vector<256x64xbf16>, vector<64x32xbf16>, vector<256x32xf32> -> vector<256x32xf32>
    %c0_9 = arith.constant 0 : index
    %c0_10 = arith.constant 0 : index
    %12 = vector.load %arg5[%c0_9, %c0_10] : memref<1x32xf32, #tpu.memory_space<vmem>>, vector<1x32xf32>
    %13 = vector.broadcast %12 : vector<1x32xf32> to vector<256x32xf32>
    %14 = arith.addf %11, %13 : vector<256x32xf32>
    %cst_11 = arith.constant 0.000000e+00 : f32
    %15 = vector.broadcast %cst_11 : f32 to vector<256x32xf32>
    %16 = arith.maximumf %14, %15 : vector<256x32xf32>
    %17 = arith.truncf %16 : vector<256x32xf32> to vector<256x32xbf16>
    %c0_12 = arith.constant 0 : index
    %c0_13 = arith.constant 0 : index
    %18 = vector.load %arg6[%c0_12, %c0_13] : memref<32x32xbf16, #tpu.memory_space<vmem>>, vector<32x32xbf16>
    %cst_14 = arith.constant dense<0.000000e+00> : vector<256x32xf32>
    %19 = tpu.matmul %17, %18, %cst_14 {dimension_numbers = #tpu.dot_dimension_numbers<[1], [0], [0], [1], [0, 0, 1, 1], [], []>} : vector<256x32xbf16>, vector<32x32xbf16>, vector<256x32xf32> -> vector<256x32xf32>
    %c0_15 = arith.constant 0 : index
    %c0_16 = arith.constant 0 : index
    %20 = vector.load %arg7[%c0_15, %c0_16] : memref<1x32xf32, #tpu.memory_space<vmem>>, vector<1x32xf32>
    %21 = vector.broadcast %20 : vector<1x32xf32> to vector<256x32xf32>
    %22 = arith.addf %19, %21 : vector<256x32xf32>
    %cst_17 = arith.constant 0.000000e+00 : f32
    %23 = vector.broadcast %cst_17 : f32 to vector<256x32xf32>
    %24 = arith.maximumf %22, %23 : vector<256x32xf32>
    %25 = arith.truncf %24 : vector<256x32xf32> to vector<256x32xbf16>
    %c0_18 = arith.constant 0 : index
    %c0_19 = arith.constant 0 : index
    %26 = vector.load %arg8[%c0_18, %c0_19] : memref<32x64xbf16, #tpu.memory_space<vmem>>, vector<32x64xbf16>
    %cst_20 = arith.constant dense<0.000000e+00> : vector<256x64xf32>
    %27 = tpu.matmul %25, %26, %cst_20 {dimension_numbers = #tpu.dot_dimension_numbers<[1], [0], [0], [1], [0, 0, 1, 1], [], []>} : vector<256x32xbf16>, vector<32x64xbf16>, vector<256x64xf32> -> vector<256x64xf32>
    %c0_21 = arith.constant 0 : index
    %c0_22 = arith.constant 0 : index
    %28 = vector.load %arg9[%c0_21, %c0_22] : memref<1x64xf32, #tpu.memory_space<vmem>>, vector<1x64xf32>
    %29 = vector.broadcast %28 : vector<1x64xf32> to vector<256x64xf32>
    %30 = arith.addf %27, %29 : vector<256x64xf32>
    %cst_23 = arith.constant 0.000000e+00 : f32
    %31 = vector.broadcast %cst_23 : f32 to vector<256x64xf32>
    %32 = arith.maximumf %30, %31 : vector<256x64xf32>
    %33 = arith.truncf %32 : vector<256x64xf32> to vector<256x64xbf16>
    %c0_24 = arith.constant 0 : index
    %c0_25 = arith.constant 0 : index
    %34 = vector.load %arg10[%c0_24, %c0_25] : memref<64x128xbf16, #tpu.memory_space<vmem>>, vector<64x128xbf16>
    %cst_26 = arith.constant dense<0.000000e+00> : vector<256x128xf32>
    %35 = tpu.matmul %33, %34, %cst_26 {dimension_numbers = #tpu.dot_dimension_numbers<[1], [0], [0], [1], [0, 0, 1, 1], [], []>} : vector<256x64xbf16>, vector<64x128xbf16>, vector<256x128xf32> -> vector<256x128xf32>
    %c0_27 = arith.constant 0 : index
    %c0_28 = arith.constant 0 : index
    %36 = vector.load %arg11[%c0_27, %c0_28] : memref<1x128xf32, #tpu.memory_space<vmem>>, vector<1x128xf32>
    %37 = vector.broadcast %36 : vector<1x128xf32> to vector<256x128xf32>
    %38 = arith.addf %35, %37 : vector<256x128xf32>
    %c0_29 = arith.constant 0 : index
    %c0_30 = arith.constant 0 : index
    %39 = vector.load %arg12[%c0_29, %c0_30] : memref<256x128xf32, #tpu.memory_space<vmem>>, vector<256x128xf32>
    tpu.vector_store %arg12[%c0_29, %c0_30], %38 {strides = array<i32>} : memref<256x128xf32, #tpu.memory_space<vmem>>, vector<256x128xf32>,
    return
  }
  func.func @transform_0(%arg0: i32) -> (i32, i32) {
    %c0_i32 = arith.constant 0 : i32
    %c0_i32_0 = arith.constant 0 : i32
    return %arg0, %c0_i32 : i32, i32
  }
  func.func @transform_1(%arg0: i32) -> (i32, i32) {
    %c0_i32 = arith.constant 0 : i32
    %c0_i32_0 = arith.constant 0 : i32
    %c0_i32_1 = arith.constant 0 : i32
    return %c0_i32, %c0_i32_0 : i32, i32
  }
  func.func @transform_2(%arg0: i32) -> (i32, i32) {
    %c0_i32 = arith.constant 0 : i32
    %c0_i32_0 = arith.constant 0 : i32
    %c0_i32_1 = arith.constant 0 : i32
    return %c0_i32, %c0_i32_0 : i32, i32
  }
  func.func @transform_3(%arg0: i32) -> (i32, i32) {
    %c0_i32 = arith.constant 0 : i32
    %c0_i32_0 = arith.constant 0 : i32
    %c0_i32_1 = arith.constant 0 : i32
    return %c0_i32, %c0_i32_0 : i32, i32
  }
  func.func @transform_4(%arg0: i32) -> (i32, i32) {
    %c0_i32 = arith.constant 0 : i32
    %c0_i32_0 = arith.constant 0 : i32
    %c0_i32_1 = arith.constant 0 : i32
    return %c0_i32, %c0_i32_0 : i32, i32
  }
  func.func @transform_5(%arg0: i32) -> (i32, i32) {
    %c0_i32 = arith.constant 0 : i32
    %c0_i32_0 = arith.constant 0 : i32
    %c0_i32_1 = arith.constant 0 : i32
    return %c0_i32, %c0_i32_0 : i32, i32
  }
  func.func @transform_6(%arg0: i32) -> (i32, i32) {
    %c0_i32 = arith.constant 0 : i32
    %c0_i32_0 = arith.constant 0 : i32
    %c0_i32_1 = arith.constant 0 : i32
    return %c0_i32, %c0_i32_0 : i32, i32
  }
  func.func @transform_7(%arg0: i32) -> (i32, i32) {
    %c0_i32 = arith.constant 0 : i32
    %c0_i32_0 = arith.constant 0 : i32
    %c0_i32_1 = arith.constant 0 : i32
    return %c0_i32, %c0_i32_0 : i32, i32
  }
  func.func @transform_8(%arg0: i32) -> (i32, i32) {
    %c0_i32 = arith.constant 0 : i32
    %c0_i32_0 = arith.constant 0 : i32
    %c0_i32_1 = arith.constant 0 : i32
    return %c0_i32, %c0_i32_0 : i32, i32
  }
  func.func @transform_9(%arg0: i32) -> (i32, i32) {
    %c0_i32 = arith.constant 0 : i32
    %c0_i32_0 = arith.constant 0 : i32
    %c0_i32_1 = arith.constant 0 : i32
    return %c0_i32, %c0_i32_0 : i32, i32
  }
  func.func @transform_10(%arg0: i32) -> (i32, i32) {
    %c0_i32 = arith.constant 0 : i32
    %c0_i32_0 = arith.constant 0 : i32
    %c0_i32_1 = arith.constant 0 : i32
    return %c0_i32, %c0_i32_0 : i32, i32
  }
  func.func @transform_11(%arg0: i32) -> (i32, i32) {
    %c0_i32 = arith.constant 0 : i32
    %c0_i32_0 = arith.constant 0 : i32
    return %arg0, %c0_i32 : i32, i32
  }
}

</mosaic_0001>

<bundles_post_ra>
// kernel: ae_forward.1
= control target key start
LH: loop header
LB: loop body
LE: loop exit
PB: predicated region body
PF: predicated region fallthrough
CT: control target
= control target key end

     0   :  { %16 = vsyncpa [#allocation3], 0  ;;  %s2537_s0 = inlined_call_operand.hbm [shape: f32[512,128], index: 0, kind: input, shape index: {}]   ;;  %s2538_s1 = inlined_call_operand.vmem [shape: bf16[128,64], index: 1, kind: input, shape index: {}]   ;;  %s2539_s2 = inlined_call_operand.vmem [shape: f32[1,64], index: 2, kind: input, shape index: {}]   ;;  %s2540_s3 = inlined_call_operand.vmem [shape: bf16[64,32], index: 3, kind: input, shape index: {}]   ;;  %s2541_s4 = inlined_call_operand.vmem [shape: f32[1,32], index: 4, kind: input, shape index: {}]   ;;  %s2542_s5 = inlined_call_operand.vmem [shape: bf16[32,32], index: 5, kind: input, shape index: {}]   ;;  %s2543_s6 = inlined_call_operand.vmem [shape: f32[1,32], index: 6, kind: input, shape index: {}]   ;;  %s2544_s7 = inlined_call_operand.vmem [shape: bf16[32,64], index: 7, kind: input, shape index: {}]   ;;  %s2545_s8 = inlined_call_operand.vmem [shape: f32[1,64], index: 8, kind: input, shape index: {}]   ;;  %s2546_s9 = inlined_call_operand.vmem [shape: bf16[64,128], index: 9, kind: input, shape index: {}]   ;;  %s2547_s10 = inlined_call_operand.vmem [shape: f32[1,128], index: 10, kind: input, shape index: {}]   ;;  %s2548_s11 = inlined_call_operand.hbm [shape: f32[512,128], index: 11, kind: output, shape index: {}]  }
   0x1   :  { %18 = vsyncpa [#allocation3 + $0x1], 0 }
   0x2   :  { %19 = vsyncpa [#allocation4], 0 }
   0x3   :  { %21 = vsyncpa [#allocation4 + $0x1], 0  ;;  %s1995_s17 = smov 0   ;;  %s1997_s18 = smov 0  }
   0x4   :  { %s1999_s19 = smov 0   ;;  %s2001_s20 = smov 0  }
   0x5 LB: > { %2554 = sst [smem:[#allocation8_spill]] %s1917_s17  ;;  %s2016_s21 = sadd.s32 4294967295, %s1929_s20   ;;  %s1929_s20 = sphi %s2001_s20, %s2567_s20   ;;  %s1925_s19 = sphi %s1999_s19, %s2569_s19   ;;  %s1921_s18 = sphi %s1997_s18, %s2571_s18   ;;  %s1917_s17 = sphi %s1995_s17, %s2570_s17  }
   0x6   : > { %2555 = sst [smem:[#allocation9_spill]] %s1925_s19  ;;  %s1590_s22 = sadd.s32 4294967294, %s1929_s20  }
   0x7   : > { %s2020_s23 = sadd.s32 1, %s1929_s20   ;;  %s34_s24 = sadd.s32 1, %s1925_s19 }
   0x8   : > { %2556 = sst [smem:[#allocation10_spill]] %s2020_s23  ;;  %s31_s25 = ssub.s32 %s1929_s20, %s2020_s23 }
   0x9   : > { %p41_p0 = scmp.ne.s32.totalorder %s1925_s19, %s1921_s18  ;;  %p32_p1 = scmp.eq.s32.totalorder %s31_s25, 0 }
   0xa   : > { %p42_p2 = scmp.eq.s32.totalorder %s1929_s20, 0  ;;  %p47_p3 = scmp.ne.s32.totalorder %s1921_s18, %s1917_s17 }
   0xb   : > { %p48_p4 = scmp.eq.s32.totalorder %s2016_s21, 0  ;;  %p281_p7 = scmp.eq.s32.totalorder %s2016_s21, 1 }
   0xc   : > { %s2032_s26 = scalar_select %p32_p1, %s1925_s19, %s34_s24  }
   0xd   : > { %p2034_p5 = por %p42_p2, %p41_p0  ;;  %p2038_p6 = por %p48_p4, %p47_p3 }
   0xe   : > { %2557 = sst [smem:[#allocation11_spill]] %s2032_s26  ;;  %p287_p8 = scmp.eq.s32.totalorder %s1590_s22, 1 }
   0xf   : > { %p1790_p10 = scmp.lt.s32.totalorder %s1929_s20, 2  ;;  %p2045_p11 = por %p281_p7, %p41_p0 }
  0x10   : > { %p2049_p12 = por %p287_p8, %p47_p3  ;;  %s337_s12 = sand.u32 1, %s1925_s19  }
  0x11   : > { %s1748_s13 = sshll.u32 %s1929_s20, 8  ;;  %s1593_s14 = sshll.u32 %s337_s12, 8 }
  0x12   : > { %s2561_s30 = scalar_select %p2049_p12, 1, 0 }
  0x13   : > { %s346_s24 = scalar_lea.hbm %s2537_s0, %s1748_s13  ;;  %s341_s22 = scalar_lea.vmem [#allocation2], %s1593_s14 }
  0x14   : > { %2562 = sst [smem:[#allocation12_spill]] %s2561_s30  ;;  %s347_s25 = sshll.u32 %s346_s24, 4  ;;  %s348_s25 = int_to_ptr.hbm [resolvable:$true] %s347_s25 }
  0x15   : > { %s349_s26 = sshll.u32 %s341_s22, 4  ;;  %p2060_p13 = pnand %p1790_p10, %p2034_p5  ;;  %s350_s26 = int_to_ptr.vmem [resolvable:$true] %s349_s26 }
  0x16   : > { %p1596_p0 = scmp.ge.s32.totalorder %s1929_s20, 1  ;;  %p357_p1 = scmp.lt.s32.totalorder %s1929_s20, 3 }
  0x17   : > { %s338_s19 = scalar_lea.sflag [#allocation3], %s337_s12  ;;  %s1833_s30 = sshra.s32 %s348_s25, 4  ;;  %s1834_s30 = int_to_ptr.hbm [resolvable:$true] %s1833_s30 }
  0x18   : > { %s1835_s17 = scalar_lea.hbm %s1834_s30, 256  ;;  %p1837_p3 = pneg %p2060_p13 }
  0x19   : > { %p1836_p2 = scmp.ne.s32.totalorder %s1834_s30, %s1835_s17  ;;  %s1840_s27 = scalar_lea.hbm %s2537_s0, 512 }
  0x1a   : > { %p1841_p5 = scmp.lt.s32.totalorder %s1834_s30, %s2537_s0  ;;  %p1842_p8 = scmp.lt.s32.totalorder %s1840_s27, %s1835_s17 }
  0x1b   : > { %p1838_p4 = pnand %p1837_p3, %p1836_p2 }
  0x1c   : > { %p1843_p10 = por %p1842_p8, %p1841_p5 }
  0x1d   : > { %p1839_p7 = pneg %p1838_p4 }
  0x1f   : > { %p1844_p9 = pnand %p1843_p10, %p1839_p7 }
  0x21   : > { %1847 = shalt.err (!%p1844_p9)
}
  0x22   : > { %s1931_s12 = smov 128   ;;  %s1932_s24 = smov 8  }
  0x23   : > { %1785 = dma.hbm_to_vmem [thread:$0]  (!%p2060_p13), %s348_s25, 4096, %s350_s26, %s338_s19, %s1931_s12, %s1931_s12, %s1932_s24  }
  0x24   : > { %p358_p2 = pnand %p1596_p0, %p357_p1 }
  0x25   : > { %s2081_s22 = sand.u32 (!%p358_p2), 1, %s1921_s18  }
  0x26   : > { %361 = sbr.rel (%p358_p2) target bundleno = 1144 (0x478), region = 64  ;;  %s1597_s17 = sshll.u32 (!%p358_p2), %s2081_s22, 8 }
  0x27   : > { %s364_s30 = scalar_lea.sflag (!%p358_p2), [#allocation3], %s2081_s22  ;;  %s2087_s13 = scalar_lea.vmem (!%p358_p2), [#allocation2], %s1597_s17 }
  0x2b   : > { %1908 = dma.done.wait (%p2038_p6), %s364_s30, 4096  }
  0x2c   : > { %1910 = vsyncadd (%p2038_p6), %s364_s30, 4294963200  ;;  %v1756_v0 = vld [vmem:[%s2538_s1 + $0x38] sm:$0xff]  ;;  %v1755_v1 = vld [vmem:[%s2538_s1 + $0x30] sm:$0xff]  ;;  %vm699_vm0 = vcmask 523264   ;;  %vm905_vm1 = vcmask 261120   ;;  %s2417_s19 = scalar_lea.vmem [#allocation5], %s1597_s17 }
  0x2d   : > { %526 = vmatpush.bf16.msra.mxu0 %v1756_v0  ;;  %v1760_v2 = vld [vmem:[%s2540_s3 + $0x18] sm:$0xff]  ;;  %v1754_v3 = vld [vmem:[%s2538_s1 + $0x28] sm:$0xff]  ;;  %v1753_v4 = vld [vmem:[%s2538_s1 + $0x20] sm:$0xff]  ;;  %s1769_s17 = sshll.u32 %s2016_s21, 8  ;;  %s1514_s14 = sshll.u32 %s2417_s19, 4  ;;  %s1515_s14 = int_to_ptr.vmem [resolvable:$true] %s1514_s14 }
  0x2e   : > { %1770 = vmatpush.bf16.msra.mxu1 %v1760_v2  ;;  %v1752_v5 = vld [vmem:[%s2538_s1 + $0x18] sm:$0xff]  ;;  %v1751_v6 = vld [vmem:[%s2538_s1 + $0x10] sm:$0xff]  ;;  %v1750_v7 = vld [vmem:[%s2538_s1 + $0x8] sm:$0xff]  ;;  %s1513_s25 = scalar_lea.hbm %s2548_s11, %s1769_s17  ;;  %s1883_s12 = scalar_lea.hbm %s2548_s11, 512 }
  0x2f   : > { %v1749_v8 = vld [vmem:[%s2538_s1] sm:$0xff]  ;;  %v411_v10 = vld [vmem:[%s2087_s13 + $0x8] sm:$0xff]  ;;  %v412_v12 = vld [vmem:[%s2087_s13 + $0x10] sm:$0xff]  ;;  %s1516_s27 = sshll.u32 %s1513_s25, 4  ;;  %s1517_s27 = int_to_ptr.hbm [resolvable:$true] %s1516_s27 }
  0x30   : > { %v410_v9 = vld [vmem:[%s2087_s13] sm:$0xff]  ;;  %v413_v13 = vld [vmem:[%s2087_s13 + $0x18] sm:$0xff]  ;;  %v415_v16 = vld [vmem:[%s2087_s13 + $0x28] sm:$0xff]  ;;  %s1877_s15 = sshra.s32 %s1517_s27, 4  ;;  %s1878_s15 = int_to_ptr.hbm [resolvable:$true] %s1877_s15 }
  0x31   : > { %527 = vmatpush.bf16.msra.mxu0 %v1755_v1  ;;  %v442_v11 = vpack.c.bf16 %v411_v10, %v410_v9  ;;  %v443_v14 = vpack.c.bf16 %v413_v13, %v412_v12  ;;  %v414_v15 = vld [vmem:[%s2087_s13 + $0x20] sm:$0xff]  ;;  %v1759_v18 = vld [vmem:[%s2540_s3 + $0x10] sm:$0xff]  ;;  %v417_v20 = vld [vmem:[%s2087_s13 + $0x38] sm:$0xff]  ;;  %s1879_s21 = scalar_lea.hbm %s1878_s15, 256  ;;  %p1884_p0 = scmp.lt.s32.totalorder %s1878_s15, %s2548_s11 }
  0x32   : > { %v444_v17 = vpack.c.bf16 %v415_v16, %v414_v15  ;;  %1771 = vmatpush.bf16.msra.mxu1 %v1759_v18  ;;  %v416_v19 = vld [vmem:[%s2087_s13 + $0x30] sm:$0xff]  ;;  %v418_v22 = vld [vmem:[%s2087_s13 + $0x40] sm:$0xff]  ;;  %v419_v23 = vld [vmem:[%s2087_s13 + $0x48] sm:$0xff]  ;;  %p1880_p6 = scmp.ne.s32.totalorder %s1878_s15, %s1879_s21  ;;  %p1885_p1 = scmp.lt.s32.totalorder %s1883_s12, %s1879_s21 }
  0x33   : > { %v445_v21 = vpack.c.bf16 %v417_v20, %v416_v19  ;;  %v446_v24 = vpack.c.bf16 %v419_v23, %v418_v22  ;;  %v420_v25 = vld [vmem:[%s2087_s13 + $0x50] sm:$0xff]  ;;  %v421_v26 = vld [vmem:[%s2087_s13 + $0x58] sm:$0xff]  ;;  %v422_v28 = vld [vmem:[%s2087_s13 + $0x60] sm:$0xff] }
  0x34   : > { %v447_v27 = vpack.c.bf16 %v421_v26, %v420_v25  ;;  %v423_v29 = vld [vmem:[%s2087_s13 + $0x68] sm:$0xff]  ;;  %v424_v32 = vld [vmem:[%s2087_s13 + $0x70] sm:$0xff]  ;;  %v425_v33 = vld [vmem:[%s2087_s13 + $0x78] sm:$0xff]  ;;  %p1881_p9 = pnand %p1880_p6, %p2045_p11  ;;  %p1886_p3 = por %p1885_p1, %p1884_p0 }
  0x35   : > { %528 = vmatpush.bf16.msra.mxu0 %v1754_v3  ;;  %v448_v30 = vpack.c.bf16 %v423_v29, %v422_v28  ;;  %v1758_v31 = vld [vmem:[%s2540_s3 + $0x8] sm:$0xff]  ;;  %v449_v34 = vpack.c.bf16 %v425_v33, %v424_v32  ;;  %v426_v35 = vld [vmem:[%s2087_s13 + $0x80] sm:$0xff]  ;;  %v428_v46 = vld [vmem:[%s2087_s13 + $0x90] sm:$0xff] }
  0x36   : > { %1772 = vmatpush.bf16.msra.mxu1 %v1758_v31  ;;  %v427_v36 = vld [vmem:[%s2087_s13 + $0x88] sm:$0xff]  ;;  %v2147_v39 = vld [vmem:[%s2539_s2] ss:$0 sm:$0xff]  ;;  %v429_v47 = vld [vmem:[%s2087_s13 + $0x98] sm:$0xff]  ;;  %p1882_p13 = pneg %p1881_p9 }
  0x37   : > { %v450_v37 = vpack.c.bf16 %v427_v36, %v426_v35  ;;  %v1757_v43 = vld [vmem:[%s2540_s3] sm:$0xff]  ;;  %v451_v49 = vpack.c.bf16 %v429_v47, %v428_v46  ;;  %v1762_v50 = vld [vmem:[%s2542_s5 + $0x8] sm:$0xff]  ;;  %v432_v3 = vld [vmem:[%s2087_s13 + $0xb0] sm:$0xff] }
  0x38   : > { %1774 = vmatpush.bf16.msra.mxu2 %v1762_v50  ;;  %1775 = vmatpush.bf16.msra.mxu3 %v1762_v50  ;;  %v430_v57 = vld [vmem:[%s2087_s13 + $0xa0] sm:$0xff]  ;;  %v431_v58 = vld [vmem:[%s2087_s13 + $0xa8] sm:$0xff]  ;;  %v436_v23 = vld [vmem:[%s2087_s13 + $0xd0] sm:$0xff]  ;;  %p1887_p4 = pnand %p1886_p3, %p1882_p13 }
  0x39   : > { %529 = vmatpush.bf16.msra.mxu0 %v1753_v4  ;;  %v452_v60 = vpack.c.bf16 %v431_v58, %v430_v57  ;;  %v433_v4 = vld [vmem:[%s2087_s13 + $0xb8] sm:$0xff]  ;;  %v434_v13 = vld [vmem:[%s2087_s13 + $0xc0] sm:$0xff] }
  0x3a   : > { %1773 = vmatpush.bf16.msra.mxu1 %v1757_v43  ;;  %v438_v33 = vld [vmem:[%s2087_s13 + $0xe0] sm:$0xff] }
  0x3d   : > { %530 = vmatpush.bf16.msra.mxu0 %v1752_v5 }
  0x3e   : > { %960 = vmatpush.bf16.msrb.mxu1 %v1762_v50 }
  0x41   : > { %531 = vmatpush.bf16.msra.mxu0 %v1751_v6  ;;  %v453_v6 = vpack.c.bf16 %v433_v4, %v432_v3 }
  0x45   : > { %532 = vmatpush.bf16.msra.mxu0 %v1750_v7 }
  0x49   : > { %533 = vmatpush.bf16.msra.mxu0 %v1749_v8 }
  0x4c   : > { %534 = vmatmul.bf16.vlgmr.msra.gmra.mxu0 %v442_v11 }
  0x4d   : > { %752 = vmatpush.bf16.msrb.mxu0 %v1760_v2 }
  0x51   : > { %753 = vmatpush.bf16.msrb.mxu0 %v1759_v18 }
  0x55   : > { %754 = vmatpush.bf16.msrb.mxu0 %v1758_v31 }
  0x59   : > { %755 = vmatpush.bf16.msrb.mxu0 %v1757_v43 }
  0x5c   : > { %539 = vmatmul.bf16.gmra.mxu0 %v443_v14  ;;  %v435_v14 = vld [vmem:[%s2087_s13 + $0xc8] sm:$0xff] }
  0x5d   : > { %v454_v16 = vpack.c.bf16 %v435_v14, %v434_v13  ;;  %v2213_v14 = vld [vmem:[%s2541_s4] ss:$0 sm:$0xff] }
  0x6c   : > { %544 = vmatmul.bf16.gmra.mxu0 %v444_v17 }
  0x7c   : > { %549 = vmatmul.bf16.gmra.mxu0 %v445_v21 }
  0x8c   : > { %554 = vmatmul.bf16.gmra.mxu0 %v446_v24  ;;  %v437_v24 = vld [vmem:[%s2087_s13 + $0xd8] sm:$0xff] }
  0x8d   : > { %v455_v26 = vpack.c.bf16 %v437_v24, %v436_v23 }
  0x9c   : > { %559 = vmatmul.bf16.gmra.mxu0 %v447_v27 }
  0xac   : > { %564 = vmatmul.bf16.gmra.mxu0 %v448_v30 }
  0xbc   : > { %569 = vmatmul.bf16.gmra.mxu0 %v449_v34  ;;  %v439_v34 = vld [vmem:[%s2087_s13 + $0xe8] sm:$0xff] }
  0xbd   : > { %v456_v36 = vpack.c.bf16 %v439_v34, %v438_v33 }
  0xc9   : > { %v535_v38 = vpop.f32.mrf.mxu0 }
  0xca   : > { %v536_v40 = vadd.f32 %v2147_v39, %v535_v38 }
  0xcc   : > { %574 = vmatmul.bf16.gmra.mxu0 %v450_v37  ;;  %v615_v44 = vmax.f32 %v536_v40, 0.0 }
  0xd1   : > { %v537_v41 = vpop.f32.mrf.mxu0 }
  0xd2   : > { %v538_v42 = vadd.f32 %v2147_v39, %v537_v41 }
  0xd4   : > { %v616_v45 = vmax.f32 %v538_v42, 0.0 }
  0xd6   : > { %v2156_v48 = vpack.c.bf16 %v616_v45, %v615_v44  ;;  %v440_v44 = vld [vmem:[%s2087_s13 + $0xf0] sm:$0xff]  ;;  %v441_v45 = vld [vmem:[%s2087_s13 + $0xf8] sm:$0xff]  ;;  %s1502_s13 = scalar_lea.sflag [#allocation4], %s2081_s22 }
  0xd7   : > { %v457_v47 = vpack.c.bf16 %v441_v45, %v440_v44 }
  0xd9   : > { %v540_v51 = vpop.f32.mrf.mxu0 }
  0xda   : > { %v541_v52 = vadd.f32 %v2147_v39, %v540_v51 }
  0xdc   : > { %579 = vmatmul.bf16.gmra.mxu0 %v451_v49  ;;  %v617_v55 = vmax.f32 %v541_v52, 0.0 }
  0xe1   : > { %v542_v53 = vpop.f32.mrf.mxu0 }
  0xe2   : > { %v543_v54 = vadd.f32 %v2147_v39, %v542_v53 }
  0xe4   : > { %v618_v56 = vmax.f32 %v543_v54, 0.0 }
  0xe6   : > { %v2165_v59 = vpack.c.bf16 %v618_v56, %v617_v55  ;;  %v1761_v56 = vld [vmem:[%s2542_s5] sm:$0xff] }
  0xe7   : > { %961 = vmatpush.bf16.msrb.mxu1 %v1761_v56  ;;  %1776 = vmatpush.bf16.msra.mxu2 %v1761_v56 }
  0xe8   : > { %1777 = vmatpush.bf16.msra.mxu3 %v1761_v56 }
  0xe9   : > { %v545_v61 = vpop.f32.mrf.mxu0 }
  0xea   : > { %v546_v62 = vadd.f32 %v2147_v39, %v545_v61 }
  0xec   : > { %584 = vmatmul.bf16.gmra.mxu0 %v452_v60  ;;  %v619_v1 = vmax.f32 %v546_v62, 0.0 }
  0xf1   : > { %v547_v63 = vpop.f32.mrf.mxu0 }
  0xf2   : > { %v548_v0 = vadd.f32 %v2147_v39, %v547_v63 }
  0xf4   : > { %v620_v2 = vmax.f32 %v548_v0, 0.0 }
  0xf6   : > { %v649_v5 = vpack.c.bf16 %v620_v2, %v619_v1 }
  0xf8   : > { %1649 = vmatmul.msk.bf16.vlgmr.msra.gmra.mxu1 %vm699_vm0, %v649_v5 }
  0xf9   : > { %v550_v7 = vpop.f32.mrf.mxu0 }
  0xfa   : > { %v551_v8 = vadd.f32 %v2147_v39, %v550_v7 }
  0xfc   : > { %589 = vmatmul.bf16.gmra.mxu0 %v453_v6  ;;  %v621_v11 = vmax.f32 %v551_v8, 0.0 }
 0x101   : > { %v552_v9 = vpop.f32.mrf.mxu0 }
 0x102   : > { %v553_v10 = vadd.f32 %v2147_v39, %v552_v9 }
 0x104   : > { %v622_v12 = vmax.f32 %v553_v10, 0.0 }
 0x106   : > { %v650_v15 = vpack.c.bf16 %v622_v12, %v621_v11 }
 0x108   : > { %1650 = vmatmul.msk.bf16.gmra.mxu1 %vm699_vm0, %v650_v15 }
 0x109   : > { %v555_v17 = vpop.f32.mrf.mxu0 }
 0x10a   : > { %v556_v18 = vadd.f32 %v2147_v39, %v555_v17 }
 0x10c   : > { %594 = vmatmul.bf16.gmra.mxu0 %v454_v16  ;;  %v623_v21 = vmax.f32 %v556_v18, 0.0 }
 0x111   : > { %v557_v19 = vpop.f32.mrf.mxu0 }
 0x112   : > { %v558_v20 = vadd.f32 %v2147_v39, %v557_v19 }
 0x114   : > { %v624_v22 = vmax.f32 %v558_v20, 0.0 }
 0x116   : > { %v651_v25 = vpack.c.bf16 %v624_v22, %v623_v21 }
 0x118   : > { %1651 = vmatmul.msk.bf16.gmra.mxu1 %vm699_vm0, %v651_v25 }
 0x119   : > { %v560_v27 = vpop.f32.mrf.mxu0 }
 0x11a   : > { %v561_v28 = vadd.f32 %v2147_v39, %v560_v27 }
 0x11c   : > { %599 = vmatmul.bf16.gmra.mxu0 %v455_v26  ;;  %v625_v31 = vmax.f32 %v561_v28, 0.0 }
 0x121   : > { %v562_v29 = vpop.f32.mrf.mxu0 }
 0x122   : > { %v563_v30 = vadd.f32 %v2147_v39, %v562_v29 }
 0x124   : > { %v626_v32 = vmax.f32 %v563_v30, 0.0 }
 0x126   : > { %v652_v35 = vpack.c.bf16 %v626_v32, %v625_v31 }
 0x128   : > { %1652 = vmatmul.msk.bf16.gmra.mxu1 %vm699_vm0, %v652_v35 }
 0x129   : > { %v565_v37 = vpop.f32.mrf.mxu0 }
 0x12a   : > { %v566_v38 = vadd.f32 %v2147_v39, %v565_v37 }
 0x12c   : > { %604 = vmatmul.bf16.gmra.mxu0 %v456_v36  ;;  %v627_v42 = vmax.f32 %v566_v38, 0.0 }
 0x131   : > { %v567_v40 = vpop.f32.mrf.mxu0 }
 0x132   : > { %v568_v41 = vadd.f32 %v2147_v39, %v567_v40 }
 0x134   : > { %v628_v43 = vmax.f32 %v568_v41, 0.0 }
 0x136   : > { %v653_v46 = vpack.c.bf16 %v628_v43, %v627_v42 }
 0x138   : > { %1653 = vmatmul.msk.bf16.gmra.mxu1 %vm699_vm0, %v653_v46 }
 0x139   : > { %v570_v49 = vpop.f32.mrf.mxu0 }
 0x13a   : > { %v571_v50 = vadd.f32 %v2147_v39, %v570_v49 }
 0x13c   : > { %609 = vmatmul.bf16.gmra.mxu0 %v457_v47  ;;  %v629_v53 = vmax.f32 %v571_v50, 0.0 }
 0x141   : > { %v572_v51 = vpop.f32.mrf.mxu0 }
 0x142   : > { %v573_v52 = vadd.f32 %v2147_v39, %v572_v51 }
 0x144   : > { %v630_v54 = vmax.f32 %v573_v52, 0.0 }
 0x146   : > { %v654_v55 = vpack.c.bf16 %v630_v54, %v629_v53 }
 0x148   : > { %1654 = vmatmul.msk.bf16.gmra.mxu1 %vm699_vm0, %v654_v55 }
 0x149   : > { %v575_v57 = vpop.f32.mrf.mxu0 }
 0x14a   : > { %v576_v58 = vadd.f32 %v2147_v39, %v575_v57 }
 0x14c   : > { %1647 = vmatmul.msk.bf16.vlgmr.msrb.gmra.mxu0 %vm699_vm0, %v2156_v48  ;;  %v631_v62 = vmax.f32 %v576_v58, 0.0 }
 0x151   : > { %v577_v60 = vpop.f32.mrf.mxu0 }
 0x152   : > { %v578_v61 = vadd.f32 %v2147_v39, %v577_v60 }
 0x154   : > { %v632_v63 = vmax.f32 %v578_v61, 0.0 }
 0x156   : > { %v655_v0 = vpack.c.bf16 %v632_v63, %v631_v62 }
 0x158   : > { %1655 = vmatmul.msk.bf16.gmra.mxu1 %vm699_vm0, %v655_v0 }
 0x159   : > { %v580_v1 = vpop.f32.mrf.mxu0 }
 0x15a   : > { %v581_v2 = vadd.f32 %v2147_v39, %v580_v1 }
 0x15c   : > { %1648 = vmatmul.msk.bf16.gmra.mxu0 %vm699_vm0, %v2165_v59  ;;  %v633_v48 = vmax.f32 %v581_v2, 0.0 }
 0x161   : > { %v582_v3 = vpop.f32.mrf.mxu0 }
 0x162   : > { %v583_v4 = vadd.f32 %v2147_v39, %v582_v3 }
 0x164   : > { %v634_v5 = vmax.f32 %v583_v4, 0.0 }
 0x166   : > { %v656_v6 = vpack.c.bf16 %v634_v5, %v633_v48 }
 0x168   : > { %1656 = vmatmul.msk.bf16.gmra.mxu1 %vm699_vm0, %v656_v6 }
 0x169   : > { %v585_v7 = vpop.f32.mrf.mxu0 }
 0x16a   : > { %v586_v8 = vadd.f32 %v2147_v39, %v585_v7 }
 0x16c   : > { %v635_v11 = vmax.f32 %v586_v8, 0.0 }
 0x171   : > { %v587_v9 = vpop.f32.mrf.mxu0 }
 0x172   : > { %v588_v10 = vadd.f32 %v2147_v39, %v587_v9 }
 0x174   : > { %v636_v12 = vmax.f32 %v588_v10, 0.0 }
 0x175   : > { %v767_v13 = vpop.f32.mrf.mxu1 }
 0x176   : > { %v657_v59 = vpack.c.bf16 %v636_v12, %v635_v11  ;;  %v768_v16 = vadd.f32 %v2213_v14, %v767_v13 }
 0x178   : > { %1657 = vmatmul.msk.bf16.gmra.mxu1 %vm699_vm0, %v657_v59  ;;  %v841_v19 = vmax.f32 %v768_v16, 0.0 }
 0x179   : > { %v590_v15 = vpop.f32.mrf.mxu0 }
 0x17a   : > { %v591_v20 = vadd.f32 %v2147_v39, %v590_v15 }
 0x17c   : > { %v637_v25 = vmax.f32 %v591_v20, 0.0 }
 0x17d   : > { %v769_v17 = vpop.f32.mrf.mxu1 }
 0x17e   : > { %v770_v18 = vadd.f32 %v2213_v14, %v769_v17 }
 0x180   : > { %v842_v21 = vmax.f32 %v770_v18, 0.0 }
 0x181   : > { %v592_v22 = vpop.f32.mrf.mxu0 }
 0x182   : > { %v2219_v23 = vpack.c.bf16 %v842_v21, %v841_v19  ;;  %v593_v24 = vadd.f32 %v2147_v39, %v592_v22 }
 0x184   : > { %v638_v26 = vmax.f32 %v593_v24, 0.0 }
 0x185   : > { %v772_v27 = vpop.f32.mrf.mxu1 }
 0x186   : > { %v658_v28 = vpack.c.bf16 %v638_v26, %v637_v25  ;;  %v773_v30 = vadd.f32 %v2213_v14, %v772_v27 }
 0x188   : > { %1658 = vmatmul.msk.bf16.gmra.mxu1 %vm699_vm0, %v658_v28  ;;  %v843_v33 = vmax.f32 %v773_v30, 0.0 }
 0x189   : > { %v595_v29 = vpop.f32.mrf.mxu0 }
 0x18a   : > { %v596_v34 = vadd.f32 %v2147_v39, %v595_v29 }
 0x18c   : > { %v639_v40 = vmax.f32 %v596_v34, 0.0 }
 0x18d   : > { %v774_v31 = vpop.f32.mrf.mxu1 }
 0x18e   : > { %v775_v32 = vadd.f32 %v2213_v14, %v774_v31 }
 0x190   : > { %v844_v35 = vmax.f32 %v775_v32, 0.0 }
 0x191   : > { %v597_v36 = vpop.f32.mrf.mxu0 }
 0x192   : > { %v2226_v37 = vpack.c.bf16 %v844_v35, %v843_v33  ;;  %v598_v38 = vadd.f32 %v2147_v39, %v597_v36 }
 0x194   : > { %v640_v41 = vmax.f32 %v598_v38, 0.0 }
 0x195   : > { %v777_v42 = vpop.f32.mrf.mxu1 }
 0x196   : > { %v659_v43 = vpack.c.bf16 %v640_v41, %v639_v40  ;;  %v778_v45 = vadd.f32 %v2213_v14, %v777_v42 }
 0x198   : > { %1659 = vmatmul.msk.bf16.gmra.mxu1 %vm699_vm0, %v659_v43  ;;  %v845_v49 = vmax.f32 %v778_v45, 0.0 }
 0x199   : > { %v600_v44 = vpop.f32.mrf.mxu0 }
 0x19a   : > { %v601_v50 = vadd.f32 %v2147_v39, %v600_v44 }
 0x19c   : > { %v641_v55 = vmax.f32 %v601_v50, 0.0 }
 0x19d   : > { %v779_v46 = vpop.f32.mrf.mxu1 }
 0x19e   : > { %v780_v47 = vadd.f32 %v2213_v14, %v779_v46 }
 0x1a0   : > { %v846_v51 = vmax.f32 %v780_v47, 0.0 }
 0x1a1   : > { %v602_v52 = vpop.f32.mrf.mxu0 }
 0x1a2   : > { %v2233_v53 = vpack.c.bf16 %v846_v51, %v845_v49  ;;  %v603_v54 = vadd.f32 %v2147_v39, %v602_v52 }
 0x1a4   : > { %v642_v56 = vmax.f32 %v603_v54, 0.0 }
 0x1a5   : > { %v782_v57 = vpop.f32.mrf.mxu1 }
 0x1a6   : > { %v660_v58 = vpack.c.bf16 %v642_v56, %v641_v55  ;;  %v783_v61 = vadd.f32 %v2213_v14, %v782_v57 }
 0x1a8   : > { %1660 = vmatmul.msk.bf16.gmra.mxu1 %vm699_vm0, %v660_v58  ;;  %v847_v0 = vmax.f32 %v783_v61, 0.0 }
 0x1a9   : > { %v605_v60 = vpop.f32.mrf.mxu0 }
 0x1aa   : > { %v606_v1 = vadd.f32 %v2147_v39, %v605_v60 }
 0x1ac   : > { %v643_v5 = vmax.f32 %v606_v1, 0.0 }
 0x1ad   : > { %v784_v62 = vpop.f32.mrf.mxu1 }
 0x1ae   : > { %v785_v63 = vadd.f32 %v2213_v14, %v784_v62  ;;  %v1764_v62 = vld [vmem:[%s2544_s7 + $0x8] sm:$0xff] }
 0x1af   : > { %1165 = vmatpush.bf16.msrb.mxu3 %v1764_v62 }
 0x1b0   : > { %v848_v2 = vmax.f32 %v785_v63, 0.0 }
 0x1b1   : > { %v607_v3 = vpop.f32.mrf.mxu0 }
 0x1b2   : > { %v2240_v4 = vpack.c.bf16 %v848_v2, %v847_v0  ;;  %v608_v48 = vadd.f32 %v2147_v39, %v607_v3 }
 0x1b4   : > { %v644_v6 = vmax.f32 %v608_v48, 0.0 }
 0x1b5   : > { %v787_v7 = vpop.f32.mrf.mxu1 }
 0x1b6   : > { %v661_v8 = vpack.c.bf16 %v644_v6, %v643_v5  ;;  %v788_v10 = vadd.f32 %v2213_v14, %v787_v7 }
 0x1b8   : > { %1661 = vmatmul.msk.bf16.gmra.mxu1 %vm699_vm0, %v661_v8  ;;  %v849_v13 = vmax.f32 %v788_v10, 0.0 }
 0x1b9   : > { %v610_v9 = vpop.f32.mrf.mxu0 }
 0x1ba   : > { %v611_v59 = vadd.f32 %v2147_v39, %v610_v9 }
 0x1bc   : > { %v645_v19 = vmax.f32 %v611_v59, 0.0 }
 0x1bd   : > { %v789_v11 = vpop.f32.mrf.mxu1 }
 0x1be   : > { %v790_v12 = vadd.f32 %v2213_v14, %v789_v11 }
 0x1c0   : > { %v850_v15 = vmax.f32 %v790_v12, 0.0 }
 0x1c1   : > { %v612_v16 = vpop.f32.mrf.mxu0 }
 0x1c2   : > { %v613_v17 = vadd.f32 %v2147_v39, %v612_v16  ;;  %v875_v18 = vpack.c.bf16 %v850_v15, %v849_v13  ;;  %v1763_v13 = vld [vmem:[%s2544_s7] sm:$0xff] }
 0x1c3   : > { %1166 = vmatpush.bf16.msrb.mxu3 %v1763_v13 }
 0x1c4   : > { %v646_v20 = vmax.f32 %v613_v17, 0.0  ;;  %1677 = vmatmul.msk.bf16.vlgmr.msra.gmra.mxu2 %vm905_vm1, %v875_v18 }
 0x1c5   : > { %v792_v21 = vpop.f32.mrf.mxu1 }
 0x1c6   : > { %v662_v22 = vpack.c.bf16 %v646_v20, %v645_v19  ;;  %v793_v25 = vadd.f32 %v2213_v14, %v792_v21 }
 0x1c8   : > { %1662 = vmatmul.msk.bf16.gmra.mxu1 %vm699_vm0, %v662_v22  ;;  %v851_v28 = vmax.f32 %v793_v25, 0.0 }
 0x1c9   : > { %v757_v24 = vpop.f32.mrf.mxu0 }
 0x1ca   : > { %v758_v29 = vadd.f32 %v2213_v14, %v757_v24 }
 0x1cc   : > { %v837_v33 = vmax.f32 %v758_v29, 0.0 }
 0x1cd   : > { %v794_v26 = vpop.f32.mrf.mxu1 }
 0x1ce   : > { %v795_v27 = vadd.f32 %v2213_v14, %v794_v26 }
 0x1d0   : > { %v852_v30 = vmax.f32 %v795_v27, 0.0 }
 0x1d1   : > { %v759_v39 = vpop.f32.mrf.mxu0 }
 0x1d2   : > { %v760_v31 = vadd.f32 %v2213_v14, %v759_v39  ;;  %v876_v32 = vpack.c.bf16 %v852_v30, %v851_v28 }
 0x1d4   : > { %v838_v34 = vmax.f32 %v760_v31, 0.0  ;;  %1678 = vmatmul.msk.bf16.gmra.mxu2 %vm905_vm1, %v876_v32 }
 0x1d5   : > { %v797_v35 = vpop.f32.mrf.mxu1 }
 0x1d6   : > { %v869_v36 = vpack.c.bf16 %v838_v34, %v837_v33  ;;  %v798_v40 = vadd.f32 %v2213_v14, %v797_v35 }
 0x1d8   : > { %1671 = vmatmul.msk.bf16.vlgmr.msrb.gmra.mxu1 %vm905_vm1, %v869_v36  ;;  %v853_v43 = vmax.f32 %v798_v40, 0.0 }
 0x1d9   : > { %v762_v38 = vpop.f32.mrf.mxu0 }
 0x1da   : > { %v763_v44 = vadd.f32 %v2213_v14, %v762_v38 }
 0x1dc   : > { %v839_v50 = vmax.f32 %v763_v44, 0.0 }
 0x1dd   : > { %v799_v41 = vpop.f32.mrf.mxu1 }
 0x1de   : > { %v800_v42 = vadd.f32 %v2213_v14, %v799_v41  ;;  %v2300_v41 = vld [vmem:[%s2543_s6] ss:$0 sm:$0xff] }
 0x1e0   : > { %v854_v45 = vmax.f32 %v800_v42, 0.0 }
 0x1e1   : > { %v764_v46 = vpop.f32.mrf.mxu0 }
 0x1e2   : > { %v765_v47 = vadd.f32 %v2213_v14, %v764_v46  ;;  %v877_v49 = vpack.c.bf16 %v854_v45, %v853_v43 }
 0x1e4   : > { %v840_v51 = vmax.f32 %v765_v47, 0.0  ;;  %1679 = vmatmul.msk.bf16.gmra.mxu2 %vm905_vm1, %v877_v49 }
 0x1e5   : > { %v802_v52 = vpop.f32.mrf.mxu1 }
 0x1e6   : > { %v870_v54 = vpack.c.bf16 %v840_v51, %v839_v50  ;;  %v803_v55 = vadd.f32 %v2213_v14, %v802_v52 }
 0x1e8   : > { %1672 = vmatmul.msk.bf16.gmra.mxu1 %vm905_vm1, %v870_v54  ;;  %v855_v58 = vmax.f32 %v803_v55, 0.0 }
 0x1ed   : > { %v804_v56 = vpop.f32.mrf.mxu1 }
 0x1ee   : > { %v805_v57 = vadd.f32 %v2213_v14, %v804_v56 }
 0x1f0   : > { %v856_v60 = vmax.f32 %v805_v57, 0.0 }
 0x1f2   : > { %v878_v61 = vpack.c.bf16 %v856_v60, %v855_v58 }
 0x1f4   : > { %1680 = vmatmul.msk.bf16.gmra.mxu2 %vm905_vm1, %v878_v61 }
 0x1f5   : > { %v807_v63 = vpop.f32.mrf.mxu1 }
 0x1f6   : > { %v808_v0 = vadd.f32 %v2213_v14, %v807_v63 }
 0x1f8   : > { %1673 = vmatmul.msk.bf16.gmra.mxu1 %vm905_vm1, %v2219_v23  ;;  %v857_v3 = vmax.f32 %v808_v0, 0.0 }
 0x1fd   : > { %v809_v1 = vpop.f32.mrf.mxu1 }
 0x1fe   : > { %v810_v2 = vadd.f32 %v2213_v14, %v809_v1  ;;  %v1768_v1 = vld [vmem:[%s2546_s9 + $0x18] sm:$0xff] }
 0x1ff   : > { %1384 = vmatpush.bf16.msrb.mxu2 %v1768_v1 }
 0x200   : > { %v858_v48 = vmax.f32 %v810_v2, 0.0 }
 0x202   : > { %v879_v5 = vpack.c.bf16 %v858_v48, %v857_v3 }
 0x204   : > { %1681 = vmatmul.msk.bf16.gmra.mxu2 %vm905_vm1, %v879_v5 }
 0x205   : > { %v812_v6 = vpop.f32.mrf.mxu1 }
 0x206   : > { %v813_v7 = vadd.f32 %v2213_v14, %v812_v6 }
 0x208   : > { %1674 = vmatmul.msk.bf16.gmra.mxu1 %vm905_vm1, %v2226_v37  ;;  %v859_v23 = vmax.f32 %v813_v7, 0.0 }
 0x20d   : > { %v814_v8 = vpop.f32.mrf.mxu1 }
 0x20e   : > { %v815_v9 = vadd.f32 %v2213_v14, %v814_v8 }
 0x210   : > { %v860_v10 = vmax.f32 %v815_v9, 0.0 }
 0x212   : > { %v880_v11 = vpack.c.bf16 %v860_v10, %v859_v23  ;;  %v1767_v23 = vld [vmem:[%s2546_s9 + $0x10] sm:$0xff] }
 0x213   : > { %1385 = vmatpush.bf16.msrb.mxu2 %v1767_v23 }
 0x214   : > { %1682 = vmatmul.msk.bf16.vlgmr.msra.gmra.mxu3 %vm905_vm1, %v880_v11 }
 0x215   : > { %v817_v12 = vpop.f32.mrf.mxu1 }
 0x216   : > { %v818_v37 = vadd.f32 %v2213_v14, %v817_v12 }
 0x218   : > { %1675 = vmatmul.msk.bf16.gmra.mxu1 %vm905_vm1, %v2233_v53  ;;  %v861_v16 = vmax.f32 %v818_v37, 0.0 }
 0x21d   : > { %v819_v59 = vpop.f32.mrf.mxu1 }
 0x21e   : > { %v820_v15 = vadd.f32 %v2213_v14, %v819_v59 }
 0x220   : > { %v862_v17 = vmax.f32 %v820_v15, 0.0 }
 0x222   : > { %v881_v18 = vpack.c.bf16 %v862_v17, %v861_v16 }
 0x224   : > { %1683 = vmatmul.msk.bf16.gmra.mxu3 %vm905_vm1, %v881_v18 }
 0x225   : > { %v822_v19 = vpop.f32.mrf.mxu1 }
 0x226   : > { %v823_v53 = vadd.f32 %v2213_v14, %v822_v19 }
 0x228   : > { %1676 = vmatmul.msk.bf16.gmra.mxu1 %vm905_vm1, %v2240_v4  ;;  %v863_v22 = vmax.f32 %v823_v53, 0.0 }
 0x22d   : > { %v824_v20 = vpop.f32.mrf.mxu1 }
 0x22e   : > { %v825_v21 = vadd.f32 %v2213_v14, %v824_v20 }
 0x230   : > { %v864_v24 = vmax.f32 %v825_v21, 0.0 }
 0x232   : > { %v882_v25 = vpack.c.bf16 %v864_v24, %v863_v22 }
 0x234   : > { %1684 = vmatmul.msk.bf16.gmra.mxu3 %vm905_vm1, %v882_v25  ;;  %v1766_v25 = vld [vmem:[%s2546_s9 + $0x8] sm:$0xff] }
 0x235   : > { %v827_v26 = vpop.f32.mrf.mxu1  ;;  %1386 = vmatpush.bf16.msrb.mxu2 %v1766_v25 }
 0x236   : > { %v828_v27 = vadd.f32 %v2213_v14, %v827_v26 }
 0x238   : > { %v865_v30 = vmax.f32 %v828_v27, 0.0 }
 0x23d   : > { %v829_v28 = vpop.f32.mrf.mxu1 }
 0x23e   : > { %v830_v29 = vadd.f32 %v2213_v14, %v829_v28 }
 0x240   : > { %v866_v39 = vmax.f32 %v830_v29, 0.0 }
 0x242   : > { %v883_v31 = vpack.c.bf16 %v866_v39, %v865_v30 }
 0x244   : > { %1685 = vmatmul.msk.bf16.gmra.mxu3 %vm905_vm1, %v883_v31 }
 0x245   : > { %v832_v4 = vpop.f32.mrf.mxu1 }
 0x246   : > { %v833_v32 = vadd.f32 %v2213_v14, %v832_v4 }
 0x247   : > { %v993_v11 = vpop.f32.mrf.mxu2 }
 0x248   : > { %v867_v35 = vmax.f32 %v833_v32, 0.0 }
 0x24d   : > { %v834_v33 = vpop.f32.mrf.mxu1 }
 0x24e   : > { %v835_v34 = vadd.f32 %v2213_v14, %v834_v33 }
 0x24f   : > { %v995_v22 = vpop.f32.mrf.mxu2 }
 0x250   : > { %v868_v36 = vmax.f32 %v835_v34, 0.0 }
 0x252   : > { %v884_v38 = vpack.c.bf16 %v868_v36, %v867_v35 }
 0x254   : > { %1686 = vmatmul.msk.bf16.gmra.mxu3 %vm905_vm1, %v884_v38 }
 0x255   : > { %v963_v40 = vpop.f32.mrf.mxu1 }
 0x256   : > { %v964_v42 = vadd.f32 %v2300_v41, %v963_v40  ;;  %v996_v40 = vadd.f32 %v2300_v41, %v995_v22 }
 0x257   : > { %v998_v32 = vpop.f32.mrf.mxu2 }
 0x258   : > { %v1043_v45 = vmax.f32 %v964_v42, 0.0 }
 0x25d   : > { %v965_v43 = vpop.f32.mrf.mxu1 }
 0x25e   : > { %v966_v44 = vadd.f32 %v2300_v41, %v965_v43  ;;  %v994_v43 = vadd.f32 %v2300_v41, %v993_v11 }
 0x25f   : > { %v1000_v42 = vpop.f32.mrf.mxu2 }
 0x260   : > { %v1044_v46 = vmax.f32 %v966_v44, 0.0  ;;  %v1056_v44 = vmax.f32 %v996_v40, 0.0 }
 0x262   : > { %v1075_v47 = vpack.c.bf16 %v1044_v46, %v1043_v45 }
 0x264   : > { %1695 = vmatmul.msk.bf16.vlgmr.msrb.gmra.mxu3 %vm905_vm1, %v1075_v47  ;;  %v1055_v47 = vmax.f32 %v994_v43, 0.0 }
 0x265   : > { %v968_v14 = vpop.f32.mrf.mxu1 }
 0x266   : > { %v969_v49 = vadd.f32 %v2300_v41, %v968_v14 }
 0x268   : > { %v1045_v52 = vmax.f32 %v969_v49, 0.0 }
 0x26d   : > { %v970_v50 = vpop.f32.mrf.mxu1 }
 0x26e   : > { %v971_v51 = vadd.f32 %v2300_v41, %v970_v50 }
 0x270   : > { %v1046_v54 = vmax.f32 %v971_v51, 0.0  ;;  %v1081_v51 = vpack.c.bf16 %v1056_v44, %v1055_v47 }
 0x272   : > { %v1076_v55 = vpack.c.bf16 %v1046_v54, %v1045_v52  ;;  %v1765_v54 = vld [vmem:[%s2546_s9] sm:$0xff] }
 0x273   : > { %1387 = vmatpush.bf16.msrb.mxu2 %v1765_v54 }
 0x274   : > { %1696 = vmatmul.msk.bf16.gmra.mxu3 %vm905_vm1, %v1076_v55  ;;  %v1003_v55 = vpop.f32.mrf.mxu2 }
 0x275   : > { %v973_v56 = vpop.f32.mrf.mxu1 }
 0x276   : > { %v974_v57 = vadd.f32 %v2300_v41, %v973_v56 }
 0x278   : > { %v1047_v61 = vmax.f32 %v974_v57, 0.0  ;;  %v1001_v57 = vadd.f32 %v2300_v41, %v1000_v42 }
 0x27d   : > { %v975_v58 = vpop.f32.mrf.mxu1 }
 0x27e   : > { %v976_v60 = vadd.f32 %v2300_v41, %v975_v58  ;;  %v999_v58 = vadd.f32 %v2300_v41, %v998_v32 }
 0x280   : > { %v1048_v62 = vmax.f32 %v976_v60, 0.0  ;;  %v1058_v60 = vmax.f32 %v1001_v57, 0.0 }
 0x282   : > { %v1077_v63 = vpack.c.bf16 %v1048_v62, %v1047_v61  ;;  %v1005_v62 = vpop.f32.mrf.mxu2 }
 0x284   : > { %1697 = vmatmul.msk.bf16.gmra.mxu3 %vm905_vm1, %v1077_v63 }
 0x285   : > { %v978_v0 = vpop.f32.mrf.mxu1 }
 0x286   : > { %v979_v2 = vadd.f32 %v2300_v41, %v978_v0  ;;  %v1057_v0 = vmax.f32 %v999_v58, 0.0 }
 0x288   : > { %v1049_v5 = vmax.f32 %v979_v2, 0.0  ;;  %v1082_v2 = vpack.c.bf16 %v1058_v60, %v1057_v0 }
 0x28d   : > { %v980_v3 = vpop.f32.mrf.mxu1 }
 0x28e   : > { %v981_v48 = vadd.f32 %v2300_v41, %v980_v3 }
 0x290   : > { %v1050_v6 = vmax.f32 %v981_v48, 0.0 }
 0x292   : > { %v1078_v7 = vpack.c.bf16 %v1050_v6, %v1049_v5 }
 0x294   : > { %1698 = vmatmul.msk.bf16.gmra.mxu3 %vm905_vm1, %v1078_v7  ;;  %v1008_v7 = vpop.f32.mrf.mxu2 }
 0x295   : > { %v983_v8 = vpop.f32.mrf.mxu1 }
 0x296   : > { %v984_v10 = vadd.f32 %v2300_v41, %v983_v8  ;;  %v1006_v8 = vadd.f32 %v2300_v41, %v1005_v62 }
 0x297   : > { %v1018_v9 = vpop.f32.mrf.mxu3 }
 0x298   : > { %v1019_v13 = vadd.f32 %v2300_v41, %v1018_v9  ;;  %v1051_v15 = vmax.f32 %v984_v10, 0.0  ;;  %v1004_v9 = vadd.f32 %v2300_v41, %v1003_v55  ;;  %v1060_v23 = vmax.f32 %v1006_v8, 0.0 }
 0x29a   : > { %v1065_v18 = vmax.f32 %v1019_v13, 0.0 }
 0x29d   : > { %v985_v12 = vpop.f32.mrf.mxu1 }
 0x29e   : > { %v986_v37 = vadd.f32 %v2300_v41, %v985_v12  ;;  %v1059_v12 = vmax.f32 %v1004_v9, 0.0 }
 0x29f   : > { %v1020_v59 = vpop.f32.mrf.mxu3 }
 0x2a0   : > { %v1052_v16 = vmax.f32 %v986_v37, 0.0  ;;  %v1021_v17 = vadd.f32 %v2300_v41, %v1020_v59  ;;  %v1083_v37 = vpack.c.bf16 %v1060_v23, %v1059_v12 }
 0x2a2   : > { %v1079_v19 = vpack.c.bf16 %v1052_v16, %v1051_v15  ;;  %v1066_v53 = vmax.f32 %v1021_v17, 0.0  ;;  %v1010_v16 = vpop.f32.mrf.mxu2 }
 0x2a4   : > { %v2324_v20 = vpack.c.bf16 %v1066_v53, %v1065_v18  ;;  %1699 = vmatmul.msk.bf16.gmra.mxu3 %vm905_vm1, %v1079_v19  ;;  %v1011_v19 = vadd.f32 %v2300_v41, %v1010_v16  ;;  %v2365_v53 = vld [vmem:[%s2545_s8] ss:$0 sm:$0xff] }
 0x2a5   : > { %v988_v21 = vpop.f32.mrf.mxu1 }
 0x2a6   : > { %v989_v26 = vadd.f32 %v2300_v41, %v988_v21  ;;  %v1009_v21 = vadd.f32 %v2300_v41, %v1008_v7 }
 0x2a7   : > { %v1023_v24 = vpop.f32.mrf.mxu3 }
 0x2a8   : > { %v1024_v28 = vadd.f32 %v2300_v41, %v1023_v24  ;;  %v1053_v39 = vmax.f32 %v989_v26, 0.0  ;;  %v1062_v24 = vmax.f32 %v1011_v19, 0.0 }
 0x2aa   : > { %v1067_v33 = vmax.f32 %v1024_v28, 0.0  ;;  %v1013_v22 = vpop.f32.mrf.mxu2 }
 0x2ad   : > { %v990_v27 = vpop.f32.mrf.mxu1 }
 0x2ae   : > { %v991_v29 = vadd.f32 %v2300_v41, %v990_v27  ;;  %v1061_v27 = vmax.f32 %v1009_v21, 0.0 }
 0x2af   : > { %v1025_v30 = vpop.f32.mrf.mxu3 }
 0x2b0   : > { %v1054_v31 = vmax.f32 %v991_v29, 0.0  ;;  %v1026_v4 = vadd.f32 %v2300_v41, %v1025_v30  ;;  %v1084_v29 = vpack.c.bf16 %v1062_v24, %v1061_v27 }
 0x2b2   : > { %v1080_v34 = vpack.c.bf16 %v1054_v31, %v1053_v39  ;;  %v1068_v35 = vmax.f32 %v1026_v4, 0.0  ;;  %v1015_v4 = vpop.f32.mrf.mxu2 }
 0x2b4   : > { %v2334_v36 = vpack.c.bf16 %v1068_v35, %v1067_v33  ;;  %1700 = vmatmul.msk.bf16.gmra.mxu3 %vm905_vm1, %v1080_v34  ;;  %v1016_v33 = vadd.f32 %v2300_v41, %v1015_v4  ;;  %v1014_v34 = vadd.f32 %v2300_v41, %v1013_v22 }
 0x2b6   : > { %v1064_v35 = vmax.f32 %v1016_v33, 0.0  ;;  %v1063_v42 = vmax.f32 %v1014_v34, 0.0 }
 0x2b7   : > { %v1028_v38 = vpop.f32.mrf.mxu3 }
 0x2b8   : > { %v1029_v45 = vadd.f32 %v2300_v41, %v1028_v38  ;;  %v1085_v44 = vpack.c.bf16 %v1064_v35, %v1063_v42 }
 0x2ba   : > { %v1069_v49 = vmax.f32 %v1029_v45, 0.0 }
 0x2bf   : > { %v1030_v46 = vpop.f32.mrf.mxu3 }
 0x2c0   : > { %v1031_v14 = vadd.f32 %v2300_v41, %v1030_v46 }
 0x2c2   : > { %v1070_v50 = vmax.f32 %v1031_v14, 0.0 }
 0x2c4   : > { %v2341_v52 = vpack.c.bf16 %v1070_v50, %v1069_v49  ;;  %1701 = vmatmul.msk.bf16.gmra.mxu3 %vm905_vm1, %v1081_v51 }
 0x2c7   : > { %v1033_v56 = vpop.f32.mrf.mxu3 }
 0x2c8   : > { %v1034_v61 = vadd.f32 %v2300_v41, %v1033_v56 }
 0x2ca   : > { %v1071_v3 = vmax.f32 %v1034_v61, 0.0 }
 0x2cf   : > { %v1035_v63 = vpop.f32.mrf.mxu3 }
 0x2d0   : > { %v1036_v1 = vadd.f32 %v2300_v41, %v1035_v63 }
 0x2d2   : > { %v1072_v48 = vmax.f32 %v1036_v1, 0.0 }
 0x2d4   : > { %v2351_v5 = vpack.c.bf16 %v1072_v48, %v1071_v3  ;;  %1702 = vmatmul.msk.bf16.gmra.mxu3 %vm905_vm1, %v1082_v2 }
 0x2d7   : > { %v1038_v6 = vpop.f32.mrf.mxu3 }
 0x2d8   : > { %v1039_v10 = vadd.f32 %v2300_v41, %v1038_v6 }
 0x2da   : > { %v1073_v59 = vmax.f32 %v1039_v10, 0.0 }
 0x2df   : > { %v1040_v11 = vpop.f32.mrf.mxu3 }
 0x2e0   : > { %v1041_v13 = vadd.f32 %v2300_v41, %v1040_v11 }
 0x2e2   : > { %v1074_v15 = vmax.f32 %v1041_v13, 0.0 }
 0x2e4   : > { %v2358_v17 = vpack.c.bf16 %v1074_v15, %v1073_v59  ;;  %1703 = vmatmul.msk.bf16.gmra.mxu3 %vm905_vm1, %v1083_v37 }
 0x2e7   : > { %v1168_v18 = vpop.f32.mrf.mxu3 }
 0x2e8   : > { %v1169_v25 = vadd.f32 %v2365_v53, %v1168_v18 }
 0x2ea   : > { %v1248_v30 = vmax.f32 %v1169_v25, 0.0 }
 0x2ef   : > { %v1170_v26 = vpop.f32.mrf.mxu3 }
 0x2f0   : > { %v1171_v28 = vadd.f32 %v2365_v53, %v1170_v26 }
 0x2f2   : > { %v1249_v39 = vmax.f32 %v1171_v28, 0.0 }
 0x2f4   : > { %v1280_v31 = vpack.c.bf16 %v1249_v39, %v1248_v30  ;;  %1704 = vmatmul.msk.bf16.gmra.mxu3 %vm905_vm1, %v1084_v29 }
 0x2f6   : > { %1727 = vmatmul.msk.bf16.vlgmr.msrb.gmra.mxu2 %vm699_vm0, %v1280_v31  ;;  %v2412_v31 = vld [vmem:[%s2547_s10] ss:$0 sm:$0xff] }
 0x2f7   : > { %v1173_v32 = vpop.f32.mrf.mxu3 }
 0x2f8   : > { %v1174_v38 = vadd.f32 %v2365_v53, %v1173_v32 }
 0x2fa   : > { %v1250_v45 = vmax.f32 %v1174_v38, 0.0 }
 0x2ff   : > { %v1175_v40 = vpop.f32.mrf.mxu3 }
 0x300   : > { %v1176_v43 = vadd.f32 %v2365_v53, %v1175_v40 }
 0x302   : > { %v1251_v46 = vmax.f32 %v1176_v43, 0.0 }
 0x304   : > { %1705 = vmatmul.msk.bf16.gmra.mxu3 %vm905_vm1, %v1085_v44  ;;  %v1281_v47 = vpack.c.bf16 %v1251_v46, %v1250_v45 }
 0x306   : > { %1728 = vmatmul.msk.bf16.gmra.mxu2 %vm699_vm0, %v1281_v47 }
 0x307   : > { %v1178_v14 = vpop.f32.mrf.mxu3 }
 0x308   : > { %v1179_v49 = vadd.f32 %v2365_v53, %v1178_v14 }
 0x30a   : > { %v1252_v51 = vmax.f32 %v1179_v49, 0.0 }
 0x30f   : > { %v1180_v50 = vpop.f32.mrf.mxu3 }
 0x310   : > { %v1181_v41 = vadd.f32 %v2365_v53, %v1180_v50 }
 0x312   : > { %v1253_v54 = vmax.f32 %v1181_v41, 0.0 }
 0x314   : > { %1706 = vmatmul.msk.bf16.gmra.mxu3 %vm905_vm1, %v2324_v20  ;;  %v1282_v55 = vpack.c.bf16 %v1253_v54, %v1252_v51 }
 0x316   : > { %1729 = vmatmul.msk.bf16.gmra.mxu2 %vm699_vm0, %v1282_v55 }
 0x317   : > { %v1183_v56 = vpop.f32.mrf.mxu3 }
 0x318   : > { %v1184_v57 = vadd.f32 %v2365_v53, %v1183_v56 }
 0x31a   : > { %v1254_v61 = vmax.f32 %v1184_v57, 0.0 }
 0x31f   : > { %v1185_v58 = vpop.f32.mrf.mxu3 }
 0x320   : > { %v1186_v60 = vadd.f32 %v2365_v53, %v1185_v58 }
 0x322   : > { %v1255_v62 = vmax.f32 %v1186_v60, 0.0 }
 0x324   : > { %1707 = vmatmul.msk.bf16.gmra.mxu3 %vm905_vm1, %v2334_v36  ;;  %v1283_v63 = vpack.c.bf16 %v1255_v62, %v1254_v61 }
 0x326   : > { %1730 = vmatmul.msk.bf16.gmra.mxu2 %vm699_vm0, %v1283_v63 }
 0x327   : > { %v1188_v0 = vpop.f32.mrf.mxu3 }
 0x328   : > { %v1189_v20 = vadd.f32 %v2365_v53, %v1188_v0 }
 0x32a   : > { %v1256_v3 = vmax.f32 %v1189_v20, 0.0 }
 0x32f   : > { %v1190_v1 = vpop.f32.mrf.mxu3 }
 0x330   : > { %v1191_v2 = vadd.f32 %v2365_v53, %v1190_v1 }
 0x332   : > { %v1257_v48 = vmax.f32 %v1191_v2, 0.0 }
 0x334   : > { %v1284_v6 = vpack.c.bf16 %v1257_v48, %v1256_v3  ;;  %1708 = vmatmul.msk.bf16.gmra.mxu3 %vm905_vm1, %v2341_v52 }
 0x336   : > { %1731 = vmatmul.msk.bf16.gmra.mxu2 %vm699_vm0, %v1284_v6 }
 0x337   : > { %v1193_v7 = vpop.f32.mrf.mxu3 }
 0x338   : > { %v1194_v36 = vadd.f32 %v2365_v53, %v1193_v7 }
 0x33a   : > { %v1258_v23 = vmax.f32 %v1194_v36, 0.0 }
 0x33f   : > { %v1195_v8 = vpop.f32.mrf.mxu3 }
 0x340   : > { %v1196_v9 = vadd.f32 %v2365_v53, %v1195_v8 }
 0x342   : > { %v1259_v10 = vmax.f32 %v1196_v9, 0.0 }
 0x344   : > { %v1285_v11 = vpack.c.bf16 %v1259_v10, %v1258_v23  ;;  %1709 = vmatmul.msk.bf16.gmra.mxu3 %vm905_vm1, %v2351_v5 }
 0x346   : > { %1732 = vmatmul.msk.bf16.gmra.mxu2 %vm699_vm0, %v1285_v11 }
 0x347   : > { %v1198_v12 = vpop.f32.mrf.mxu3 }
 0x348   : > { %v1199_v13 = vadd.f32 %v2365_v53, %v1198_v12 }
 0x34a   : > { %v1260_v59 = vmax.f32 %v1199_v13, 0.0 }
 0x34f   : > { %v1200_v52 = vpop.f32.mrf.mxu3 }
 0x350   : > { %v1201_v37 = vadd.f32 %v2365_v53, %v1200_v52 }
 0x352   : > { %v1261_v15 = vmax.f32 %v1201_v37, 0.0 }
 0x354   : > { %v1286_v16 = vpack.c.bf16 %v1261_v15, %v1260_v59  ;;  %1710 = vmatmul.msk.bf16.gmra.mxu3 %vm905_vm1, %v2358_v17 }
 0x356   : > { %1733 = vmatmul.msk.bf16.gmra.mxu2 %vm699_vm0, %v1286_v16 }
 0x357   : > { %v1203_v18 = vpop.f32.mrf.mxu3 }
 0x358   : > { %v1204_v19 = vadd.f32 %v2365_v53, %v1203_v18 }
 0x35a   : > { %v1262_v22 = vmax.f32 %v1204_v19, 0.0 }
 0x35f   : > { %v1205_v5 = vpop.f32.mrf.mxu3 }
 0x360   : > { %v1206_v21 = vadd.f32 %v2365_v53, %v1205_v5 }
 0x362   : > { %v1263_v24 = vmax.f32 %v1206_v21, 0.0 }
 0x364   : > { %v1287_v25 = vpack.c.bf16 %v1263_v24, %v1262_v22 }
 0x366   : > { %1734 = vmatmul.msk.bf16.gmra.mxu2 %vm699_vm0, %v1287_v25 }
 0x367   : > { %v1208_v26 = vpop.f32.mrf.mxu3 }
 0x368   : > { %v1209_v27 = vadd.f32 %v2365_v53, %v1208_v26 }
 0x36a   : > { %v1264_v29 = vmax.f32 %v1209_v27, 0.0 }
 0x36f   : > { %v1210_v28 = vpop.f32.mrf.mxu3 }
 0x370   : > { %v1211_v17 = vadd.f32 %v2365_v53, %v1210_v28 }
 0x372   : > { %v1265_v30 = vmax.f32 %v1211_v17, 0.0 }
 0x374   : > { %v1288_v39 = vpack.c.bf16 %v1265_v30, %v1264_v29 }
 0x376   : > { %1735 = vmatmul.msk.bf16.gmra.mxu2 %vm699_vm0, %v1288_v39 }
 0x377   : > { %v1213_v4 = vpop.f32.mrf.mxu3 }
 0x378   : > { %v1214_v34 = vadd.f32 %v2365_v53, %v1213_v4 }
 0x379   : > { %v1389_v32 = vpop.f32.mrf.mxu2 }
 0x37a   : > { %v1390_v33 = vadd.f32 %v2412_v31, %v1389_v32  ;;  %v1266_v42 = vmax.f32 %v1214_v34, 0.0 }
 0x37c   : > { %1469 = vst [vmem:[%s2417_s19] sm:$0xff] %v1390_v33 }
 0x37f   : > { %v1215_v35 = vpop.f32.mrf.mxu3 }
 0x380   : > { %v1216_v38 = vadd.f32 %v2365_v53, %v1215_v35 }
 0x381   : > { %v1391_v40 = vpop.f32.mrf.mxu2 }
 0x382   : > { %v1267_v43 = vmax.f32 %v1216_v38, 0.0  ;;  %v1392_v44 = vadd.f32 %v2412_v31, %v1391_v40 }
 0x384   : > { %v1289_v45 = vpack.c.bf16 %v1267_v43, %v1266_v42  ;;  %1470 = vst [vmem:[%s2417_s19 + $0x8] sm:$0xff] %v1392_v44 }
 0x386   : > { %1736 = vmatmul.msk.bf16.gmra.mxu2 %vm699_vm0, %v1289_v45 }
 0x387   : > { %v1218_v46 = vpop.f32.mrf.mxu3 }
 0x388   : > { %v1219_v49 = vadd.f32 %v2365_v53, %v1218_v46 }
 0x389   : > { %v1394_v47 = vpop.f32.mrf.mxu2 }
 0x38a   : > { %v1395_v14 = vadd.f32 %v2412_v31, %v1394_v47  ;;  %v1268_v54 = vmax.f32 %v1219_v49, 0.0 }
 0x38c   : > { %1471 = vst [vmem:[%s2417_s19 + $0x10] sm:$0xff] %v1395_v14 }
 0x38f   : > { %v1220_v50 = vpop.f32.mrf.mxu3 }
 0x390   : > { %v1221_v41 = vadd.f32 %v2365_v53, %v1220_v50 }
 0x391   : > { %v1396_v51 = vpop.f32.mrf.mxu2 }
 0x392   : > { %v1269_v55 = vmax.f32 %v1221_v41, 0.0  ;;  %v1397_v56 = vadd.f32 %v2412_v31, %v1396_v51 }
 0x394   : > { %v1290_v57 = vpack.c.bf16 %v1269_v55, %v1268_v54  ;;  %1472 = vst [vmem:[%s2417_s19 + $0x18] sm:$0xff] %v1397_v56 }
 0x396   : > { %1737 = vmatmul.msk.bf16.gmra.mxu2 %vm699_vm0, %v1290_v57 }
 0x397   : > { %v1223_v58 = vpop.f32.mrf.mxu3 }
 0x398   : > { %v1224_v62 = vadd.f32 %v2365_v53, %v1223_v58 }
 0x399   : > { %v1399_v60 = vpop.f32.mrf.mxu2 }
 0x39a   : > { %v1400_v61 = vadd.f32 %v2412_v31, %v1399_v60  ;;  %v1270_v1 = vmax.f32 %v1224_v62, 0.0 }
 0x39c   : > { %1473 = vst [vmem:[%s2417_s19 + $0x20] sm:$0xff] %v1400_v61 }
 0x39f   : > { %v1225_v63 = vpop.f32.mrf.mxu3 }
 0x3a0   : > { %v1226_v0 = vadd.f32 %v2365_v53, %v1225_v63 }
 0x3a1   : > { %v1401_v20 = vpop.f32.mrf.mxu2 }
 0x3a2   : > { %v1271_v2 = vmax.f32 %v1226_v0, 0.0  ;;  %v1402_v3 = vadd.f32 %v2412_v31, %v1401_v20 }
 0x3a4   : > { %v1291_v48 = vpack.c.bf16 %v1271_v2, %v1270_v1  ;;  %1474 = vst [vmem:[%s2417_s19 + $0x28] sm:$0xff] %v1402_v3 }
 0x3a6   : > { %1738 = vmatmul.msk.bf16.gmra.mxu2 %vm699_vm0, %v1291_v48 }
 0x3a7   : > { %v1228_v6 = vpop.f32.mrf.mxu3 }
 0x3a8   : > { %v1229_v8 = vadd.f32 %v2365_v53, %v1228_v6 }
 0x3a9   : > { %v1404_v7 = vpop.f32.mrf.mxu2 }
 0x3aa   : > { %v1405_v36 = vadd.f32 %v2412_v31, %v1404_v7  ;;  %v1272_v11 = vmax.f32 %v1229_v8, 0.0 }
 0x3ac   : > { %1475 = vst [vmem:[%s2417_s19 + $0x30] sm:$0xff] %v1405_v36 }
 0x3af   : > { %v1230_v9 = vpop.f32.mrf.mxu3 }
 0x3b0   : > { %v1231_v23 = vadd.f32 %v2365_v53, %v1230_v9 }
 0x3b1   : > { %v1406_v10 = vpop.f32.mrf.mxu2 }
 0x3b2   : > { %v1273_v12 = vmax.f32 %v1231_v23, 0.0  ;;  %v1407_v13 = vadd.f32 %v2412_v31, %v1406_v10 }
 0x3b4   : > { %v1292_v52 = vpack.c.bf16 %v1273_v12, %v1272_v11  ;;  %1476 = vst [vmem:[%s2417_s19 + $0x38] sm:$0xff] %v1407_v13 }
 0x3b6   : > { %1739 = vmatmul.msk.bf16.gmra.mxu2 %vm699_vm0, %v1292_v52 }
 0x3b7   : > { %v1233_v37 = vpop.f32.mrf.mxu3 }
 0x3b8   : > { %v1234_v16 = vadd.f32 %v2365_v53, %v1233_v37 }
 0x3b9   : > { %v1409_v59 = vpop.f32.mrf.mxu2 }
 0x3ba   : > { %v1410_v15 = vadd.f32 %v2412_v31, %v1409_v59  ;;  %v1274_v21 = vmax.f32 %v1234_v16, 0.0 }
 0x3bc   : > { %1477 = vst [vmem:[%s2417_s19 + $0x40] sm:$0xff] %v1410_v15 }
 0x3bf   : > { %v1235_v18 = vpop.f32.mrf.mxu3 }
 0x3c0   : > { %v1236_v19 = vadd.f32 %v2365_v53, %v1235_v18 }
 0x3c1   : > { %v1411_v5 = vpop.f32.mrf.mxu2 }
 0x3c2   : > { %v1275_v22 = vmax.f32 %v1236_v19, 0.0  ;;  %v1412_v24 = vadd.f32 %v2412_v31, %v1411_v5 }
 0x3c4   : > { %v1293_v25 = vpack.c.bf16 %v1275_v22, %v1274_v21  ;;  %1478 = vst [vmem:[%s2417_s19 + $0x48] sm:$0xff] %v1412_v24 }
 0x3c6   : > { %1740 = vmatmul.msk.bf16.gmra.mxu2 %vm699_vm0, %v1293_v25 }
 0x3c7   : > { %v1238_v26 = vpop.f32.mrf.mxu3 }
 0x3c8   : > { %v1239_v17 = vadd.f32 %v2365_v53, %v1238_v26 }
 0x3c9   : > { %v1414_v27 = vpop.f32.mrf.mxu2 }
 0x3ca   : > { %v1415_v28 = vadd.f32 %v2412_v31, %v1414_v27  ;;  %v1276_v4 = vmax.f32 %v1239_v17, 0.0 }
 0x3cc   : > { %1479 = vst [vmem:[%s2417_s19 + $0x50] sm:$0xff] %v1415_v28 }
 0x3cf   : > { %v1240_v29 = vpop.f32.mrf.mxu3 }
 0x3d0   : > { %v1241_v30 = vadd.f32 %v2365_v53, %v1240_v29 }
 0x3d1   : > { %v1416_v39 = vpop.f32.mrf.mxu2 }
 0x3d2   : > { %v1277_v32 = vmax.f32 %v1241_v30, 0.0  ;;  %v1417_v33 = vadd.f32 %v2412_v31, %v1416_v39 }
 0x3d4   : > { %v1294_v34 = vpack.c.bf16 %v1277_v32, %v1276_v4  ;;  %1480 = vst [vmem:[%s2417_s19 + $0x58] sm:$0xff] %v1417_v33 }
 0x3d6   : > { %1741 = vmatmul.msk.bf16.gmra.mxu2 %vm699_vm0, %v1294_v34 }
 0x3d7   : > { %v1243_v35 = vpop.f32.mrf.mxu3 }
 0x3d8   : > { %v1244_v42 = vadd.f32 %v2365_v53, %v1243_v35 }
 0x3d9   : > { %v1419_v38 = vpop.f32.mrf.mxu2 }
 0x3da   : > { %v1420_v40 = vadd.f32 %v2412_v31, %v1419_v38  ;;  %v1278_v46 = vmax.f32 %v1244_v42, 0.0 }
 0x3dc   : > { %1481 = vst [vmem:[%s2417_s19 + $0x60] sm:$0xff] %v1420_v40 }
 0x3df   : > { %v1245_v43 = vpop.f32.mrf.mxu3 }
 0x3e0   : > { %v1246_v44 = vadd.f32 %v2365_v53, %v1245_v43 }
 0x3e1   : > { %v1421_v45 = vpop.f32.mrf.mxu2 }
 0x3e2   : > { %v1279_v47 = vmax.f32 %v1246_v44, 0.0  ;;  %v1422_v14 = vadd.f32 %v2412_v31, %v1421_v45 }
 0x3e4   : > { %v1295_v49 = vpack.c.bf16 %v1279_v47, %v1278_v46  ;;  %1482 = vst [vmem:[%s2417_s19 + $0x68] sm:$0xff] %v1422_v14 }
 0x3e6   : > { %1742 = vmatmul.msk.bf16.gmra.mxu2 %vm699_vm0, %v1295_v49 }
 0x3e9   : > { %v1424_v50 = vpop.f32.mrf.mxu2 }
 0x3ea   : > { %v1425_v41 = vadd.f32 %v2412_v31, %v1424_v50 }
 0x3ec   : > { %1483 = vst [vmem:[%s2417_s19 + $0x70] sm:$0xff] %v1425_v41 }
 0x3f1   : > { %v1426_v51 = vpop.f32.mrf.mxu2 }
 0x3f2   : > { %v1427_v53 = vadd.f32 %v2412_v31, %v1426_v51 }
 0x3f4   : > { %1484 = vst [vmem:[%s2417_s19 + $0x78] sm:$0xff] %v1427_v53 }
 0x3f9   : > { %v1429_v54 = vpop.f32.mrf.mxu2 }
 0x3fa   : > { %v1430_v55 = vadd.f32 %v2412_v31, %v1429_v54 }
 0x3fc   : > { %1485 = vst [vmem:[%s2417_s19 + $0x80] sm:$0xff] %v1430_v55 }
 0x401   : > { %v1431_v56 = vpop.f32.mrf.mxu2 }
 0x402   : > { %v1432_v57 = vadd.f32 %v2412_v31, %v1431_v56 }
 0x404   : > { %1486 = vst [vmem:[%s2417_s19 + $0x88] sm:$0xff] %v1432_v57 }
 0x409   : > { %v1434_v58 = vpop.f32.mrf.mxu2 }
 0x40a   : > { %v1435_v60 = vadd.f32 %v2412_v31, %v1434_v58 }
 0x40c   : > { %1487 = vst [vmem:[%s2417_s19 + $0x90] sm:$0xff] %v1435_v60 }
 0x411   : > { %v1436_v61 = vpop.f32.mrf.mxu2 }
 0x412   : > { %v1437_v62 = vadd.f32 %v2412_v31, %v1436_v61 }
 0x414   : > { %1488 = vst [vmem:[%s2417_s19 + $0x98] sm:$0xff] %v1437_v62 }
 0x419   : > { %v1439_v63 = vpop.f32.mrf.mxu2 }
 0x41a   : > { %v1440_v0 = vadd.f32 %v2412_v31, %v1439_v63 }
 0x41c   : > { %1489 = vst [vmem:[%s2417_s19 + $0xa0] sm:$0xff] %v1440_v0 }
 0x421   : > { %v1441_v20 = vpop.f32.mrf.mxu2 }
 0x422   : > { %v1442_v1 = vadd.f32 %v2412_v31, %v1441_v20 }
 0x424   : > { %1490 = vst [vmem:[%s2417_s19 + $0xa8] sm:$0xff] %v1442_v1 }
 0x429   : > { %v1444_v2 = vpop.f32.mrf.mxu2 }
 0x42a   : > { %v1445_v3 = vadd.f32 %v2412_v31, %v1444_v2 }
 0x42c   : > { %1491 = vst [vmem:[%s2417_s19 + $0xb0] sm:$0xff] %v1445_v3 }
 0x431   : > { %v1446_v48 = vpop.f32.mrf.mxu2 }
 0x432   : > { %v1447_v6 = vadd.f32 %v2412_v31, %v1446_v48 }
 0x434   : > { %1492 = vst [vmem:[%s2417_s19 + $0xb8] sm:$0xff] %v1447_v6 }
 0x439   : > { %v1449_v7 = vpop.f32.mrf.mxu2 }
 0x43a   : > { %v1450_v36 = vadd.f32 %v2412_v31, %v1449_v7 }
 0x43c   : > { %1493 = vst [vmem:[%s2417_s19 + $0xc0] sm:$0xff] %v1450_v36 }
 0x441   : > { %v1451_v8 = vpop.f32.mrf.mxu2 }
 0x442   : > { %v1452_v9 = vadd.f32 %v2412_v31, %v1451_v8 }
 0x444   : > { %1494 = vst [vmem:[%s2417_s19 + $0xc8] sm:$0xff] %v1452_v9 }
 0x449   : > { %v1454_v23 = vpop.f32.mrf.mxu2 }
 0x44a   : > { %v1455_v10 = vadd.f32 %v2412_v31, %v1454_v23 }
 0x44c   : > { %1495 = vst [vmem:[%s2417_s19 + $0xd0] sm:$0xff] %v1455_v10 }
 0x451   : > { %v1456_v11 = vpop.f32.mrf.mxu2 }
 0x452   : > { %v1457_v12 = vadd.f32 %v2412_v31, %v1456_v11 }
 0x454   : > { %1496 = vst [vmem:[%s2417_s19 + $0xd8] sm:$0xff] %v1457_v12 }
 0x459   : > { %v1459_v13 = vpop.f32.mrf.mxu2 }
 0x45a   : > { %v1460_v52 = vadd.f32 %v2412_v31, %v1459_v13 }
 0x45c   : > { %1497 = vst [vmem:[%s2417_s19 + $0xe0] sm:$0xff] %v1460_v52 }
 0x461   : > { %v1461_v37 = vpop.f32.mrf.mxu2 }
 0x462   : > { %v1462_v59 = vadd.f32 %v2412_v31, %v1461_v37 }
 0x464   : > { %1498 = vst [vmem:[%s2417_s19 + $0xe8] sm:$0xff] %v1462_v59 }
 0x469   : > { %v1464_v15 = vpop.f32.mrf.mxu2 }
 0x46a   : > { %v1465_v16 = vadd.f32 %v2412_v31, %v1464_v15 }
 0x46c   : > { %1499 = vst [vmem:[%s2417_s19 + $0xf0] sm:$0xff] %v1465_v16 }
 0x471   : > { %v1466_v18 = vpop.f32.mrf.mxu2 }
 0x472   : > { %v1467_v19 = vadd.f32 %v2412_v31, %v1466_v18 }
 0x474   : > { %1500 = vst [vmem:[%s2417_s19 + $0xf8] sm:$0xff] %v1467_v19 }
 0x475   : > { %1890 = shalt.err (!%p1887_p4)
}
 0x476   : > { %s1933_s22 = smov 128   ;;  %s1934_s19 = smov 8  }
 0x477   : > { %1780 = dma.vmem_to_hbm [thread:$0]  (%p2045_p11), %s1515_s14, 4096, %s1517_s27, %s1502_s13, %s1933_s22, %s1933_s22, %s1934_s19  }
 0x478 PF: > { %s2564_s17 = sld [smem:[#allocation8_spill]]  ;;  %p2566_p7 = scmp.ge.s32.totalorder %s1929_s20, 2 }
 0x47a   : > { %p1787_p5 = pnand %p2566_p7, %p2049_p12 }
 0x47c   : > { %p1788_p8 = pneg %p1787_p5 }
 0x47e   : > { %s1531_s26 = sand.u32 1, %s2564_s17  }
 0x47f   : > { %s1532_s25 = scalar_lea.sflag [#allocation4], %s1531_s26 }
 0x480   : > { %1912 = dma.done.wait (%p1788_p8), %s1532_s25, 4096  }
 0x481   : > { %1914 = vsyncadd (%p1788_p8), %s1532_s25, 4294963200  ;;  %s2567_s20 = sld [smem:[#allocation10_spill]]  ;;  %s2570_s17 = smov %s1921_s18 }
 0x482   : > { %s2568_s15 = sld [smem:[#allocation9_spill]] }
 0x483   : > { %s2569_s19 = sld [smem:[#allocation11_spill]] }
 0x487   : > { %p24_p10 = scmp.ge.s32.totalorder %s2567_s20, 4  }
 0x488   : > { %s2571_s18 = smov %s2568_s15 }
 0x489   :  { %26 = sbr.rel (!%p24_p10) target bundleno = 5 (0x5), region = 109 }
 0x48e   :  { %1538 = vsyncpa [#allocation3], 1 }
 0x48f   :  { %1540 = vsyncpa [#allocation3 + $0x1], 1 }
 0x490   :  { %1541 = vsyncpa [#allocation4], 1 }
 0x491   :  { %1543 = vsyncpa [#allocation4 + $0x1], 1 }

</bundles_post_ra>
